<compile_context>
chip_gen: v6e
topology: v6e:2x2x1
jax: 0.10.0
libtpu: 0.0.40
codegen_flags: <defaults>
</compile_context>

<pallas_src>
import math
import functools

import jax
import jax.numpy as jnp
from jax.experimental import pallas as pl
from jax.experimental.pallas import tpu as pltpu


# ----------------------------------------------------------------------------
# Fused multi-layer kernel: grid = (batch_block, layer)
# ----------------------------------------------------------------------------
def _fused_layers_kernel(hq_ref, hv_ref, maskb_ref,
                         wq_ref, wkv_ref, wd_ref, wi_ref, wo_ref,
                         bqkv_ref, bi_ref, vec_ref,
                         out_ref, x_ref, *, num_heads, head_size, lq, lv):
    layer = pl.program_id(1)
    n_layers = pl.num_programs(1)

    rows_q, H = x_ref.shape
    Bt = rows_q // lq
    nh, hd = num_heads, head_size
    A = nh * hd

    f32 = jnp.float32
    bf16 = jnp.bfloat16
    eps = 1e-5  # nn.LayerNorm default

    # First layer of this batch block: load the input activation into the
    # layer-resident f32 carry.
    @pl.when(layer == 0)
    def _():
        x_ref[...] = hq_ref[...]

    def layernorm(y, g, b):
        mu = jnp.mean(y, axis=-1, keepdims=True)
        var = jnp.mean(jnp.square(y - mu), axis=-1, keepdims=True)
        return (y - mu) * jax.lax.rsqrt(var + eps) * g + b

    def gelu_exact(y):  # nn.GELU() default = exact erf formulation
        return 0.5 * y * (1.0 + jax.lax.erf(y * (1.0 / math.sqrt(2.0))))

    x2d = x_ref[...]                 # (Bt*lq, H) f32 residual carry
    hv2d = hv_ref[...]               # (Bt*lv, H) bf16 (pre-cast in wrapper)
    mask3 = maskb_ref[...]           # (Bt, 1, lv) f32 additive mask bias

    bqkv = bqkv_ref[0]               # (1, 3A) = [bq*scale | bk | bv]
    vecs = vec_ref[0]                # (6, H)  = [bd, g1, be1, bo, g2, be2]
    b_d, g1, be1 = vecs[0:1], vecs[1:2], vecs[2:3]
    b_o, g2, be2 = vecs[3:4], vecs[4:5], vecs[5:6]

    # ---- Q projection + fused K/V projection (bf16 in, f32 acc).
    # The 1/sqrt(hd) softmax scale is already folded into wq / bq.
    q2d = jnp.dot(x2d.astype(bf16), wq_ref[0],
                  preferred_element_type=f32) + bqkv[:, :A]        # (Bt*lq, A)
    kv2d = jnp.dot(hv2d, wkv_ref[0],
                   preferred_element_type=f32) + bqkv[:, A:]       # (Bt*lv, 2A)

    # Leading-dim splits (lq mult of 8, lv mult of 16 -> tile-aligned no-ops),
    # then a single cast per tensor.
    q3 = q2d.reshape(Bt, lq, A).astype(bf16)
    k3 = kv2d[:, :A].reshape(Bt, lv, A).astype(bf16)
    v3 = kv2d[:, A:].reshape(Bt, lv, A).astype(bf16)

    wd = wd_ref[0]                   # (A, H) bf16

    # ---- attention: per-head unrolled loop, no concatenates ----------------
    # Each head's context feeds its own slice of the output projection and is
    # accumulated directly into the attention output.
    attn2d = None
    for h in range(nh):
        lo = h * hd
        qh = q3[:, :, lo:lo + hd]
        kh = k3[:, :, lo:lo + hd]
        vh = v3[:, :, lo:lo + hd]
        s = jnp.einsum('bqd,bkd->bqk', qh, kh,
                       preferred_element_type=f32)                 # (Bt, lq, lv)
        s = s + mask3                                              # broadcast add
        s = s - jnp.max(s, axis=-1, keepdims=True)                 # stable softmax
        p = jnp.exp(s)
        p = p * pl.reciprocal(jnp.sum(p, axis=-1, keepdims=True), approx=True)
        # TODO(synk): attention_probs dropout skipped (eval mode identity).
        ctx_h = jnp.einsum('bqk,bkd->bqd', p.astype(bf16), vh,
                           preferred_element_type=f32)             # (Bt, lq, hd)
        proj_h = jnp.dot(ctx_h.reshape(Bt * lq, hd).astype(bf16),
                         wd[lo:lo + hd, :], preferred_element_type=f32)
        attn2d = proj_h if attn2d is None else attn2d + proj_h

    # ---- attention output bias + residual + LayerNorm -----------------------
    attn = layernorm(attn2d + b_d + x2d, g1, be1)                  # (Bt*lq, H) f32

    # ---- feed-forward (exact GELU) + residual + LayerNorm --------------------
    inter = gelu_exact(jnp.dot(attn.astype(bf16), wi_ref[0],
                               preferred_element_type=f32) + bi_ref[0])
    ffn = jnp.dot(inter.astype(bf16), wo_ref[0],
                  preferred_element_type=f32) + b_o
    y = layernorm(ffn + attn, g2, be2)                             # (Bt*lq, H) f32

    x_ref[...] = y                   # carry to next layer (stays in VMEM)

    @pl.when(layer == n_layers - 1)
    def _():
        out_ref[...] = y.astype(out_ref.dtype)


# ----------------------------------------------------------------------------
# Wrapper helpers
# ----------------------------------------------------------------------------
def _pad_axis1(x, mult):
    pad = (-x.shape[1]) % mult
    if pad:
        cfg = [(0, 0)] * x.ndim
        cfg[1] = (0, pad)
        x = jnp.pad(x, cfg)
    return x


def _default_batch_block(B, lq):
    # Prefer >=2 grid steps on the "parallel" axis (v7x has 2 TensorCores)
    # while keeping >=256 MXU rows per step so per-layer weight re-streaming
    # stays amortized (v5e/v6e).  Small problems fall back to the whole batch.
    for bt in range(B // 2, 0, -1):
        if B % bt == 0 and bt * lq >= 256:
            return bt
    return B


def _vmem_limit_bytes(Bt, lq, lv, H, A, I):
    # Rough per-step VMEM footprint: double-buffered weights + I/O tiles,
    # carry, and one head's f32 scores (headroom 2x), clamped to the physical
    # capacity of the device generation (v7x = 64 MiB).
    w_layer = (H * A + H * 2 * A + A * H + H * I + I * H) * 2 \
              + (3 * A + I + 6 * H) * 4
    acts = (Bt * lq * H) * 4 * 3 + (Bt * lv * H) * 2 + (Bt * lv) * 4
    scores = (Bt * lq * lv) * 4 * 2
    need = 2 * (w_layer + acts) + scores
    try:
        cap = pltpu.get_tpu_info().vmem_capacity_bytes
    except Exception:
        cap = 64 * 1024 * 1024
    return int(min(max(2 * need, 32 * 1024 * 1024), int(cap * 0.9)))


# ----------------------------------------------------------------------------
# Wrapper: one pallas_call for all layers
# ----------------------------------------------------------------------------
def multilayer_cross_transformer(hq, hv, attention_mask, packed, *,
                                 num_heads, head_size, reduction="top",
                                 batch_block=None):
    B, Lq, H = hq.shape
    _, Lv, _ = hv.shape
    n_layers = packed["wq"].shape[0]
    A = num_heads * head_size
    I = packed["wi"].shape[-1]

    # Pad sequence lengths so all in-kernel reshapes are tile aligned
    # (Lq -> multiple of 8 for f32, Lv -> multiple of 16 for the bf16 hv).
    hq_p = _pad_axis1(hq.astype(jnp.float32), 8)
    hv_p = _pad_axis1(hv.astype(jnp.float32), 16)
    Lqp, Lvp = hq_p.shape[1], hv_p.shape[1]

    base_mask = (attention_mask.astype(jnp.float32) if attention_mask is not None
                 else jnp.ones((B, Lv), jnp.float32))
    if Lvp > Lv:
        base_mask = jnp.pad(base_mask, ((0, 0), (0, Lvp - Lv)))  # pad keys masked
    mask_bias = ((1.0 - base_mask) * -10000000.0)[:, None, :]    # (B, 1, Lvp)

    Bt = _default_batch_block(B, Lqp) if batch_block is None else min(batch_block, B)
    assert B % Bt == 0, "batch_block must divide the batch size"

    # Lane-friendly 2-D slabs; hv pre-cast to bf16 (layer-invariant).
    hq_flat = hq_p.reshape(B * Lqp, H)
    hv_flat = hv_p.astype(jnp.bfloat16).reshape(B * Lvp, H)

    grid = (B // Bt, n_layers)

    def bspec(shape):
        nd = len(shape)
        return pl.BlockSpec(shape, lambda bb, l: (bb,) + (0,) * (nd - 1))

    def lspec(shape):
        nd = len(shape)
        return pl.BlockSpec((1,) + shape, lambda bb, l: (l,) + (0,) * nd)

    kernel = functools.partial(_fused_layers_kernel, num_heads=num_heads,
                               head_size=head_size, lq=Lqp, lv=Lvp)

    out = pl.pallas_call(
        kernel,
        out_shape=jax.ShapeDtypeStruct((B * Lqp, H), jnp.float32),
        grid_spec=pltpu.PrefetchScalarGridSpec(
            num_scalar_prefetch=0,
            grid=grid,
            in_specs=[
                bspec((Bt * Lqp, H)),          # hq rows (f32)
                bspec((Bt * Lvp, H)),          # hv rows (bf16)
                bspec((Bt, 1, Lvp)),           # additive mask bias (f32)
                lspec((H, A)),                 # wq (scale folded in, bf16)
                lspec((H, 2 * A)),             # wk | wv (bf16)
                lspec((A, H)),                 # wd (bf16)
                lspec((H, I)),                 # wi (bf16)
                lspec((I, H)),                 # wo (bf16)
                lspec((1, 3 * A)),             # bq*scale | bk | bv (f32)
                lspec((1, I)),                 # bi (f32)
                lspec((6, H)),                 # bd, g1, be1, bo, g2, be2 (f32)
            ],
            out_specs=bspec((Bt * Lqp, H)),
            scratch_shapes=[pltpu.VMEM((Bt * Lqp, H), jnp.float32)],
        ),
        compiler_params=pltpu.CompilerParams(
            dimension_semantics=("parallel", "arbitrary"),
            vmem_limit_bytes=_vmem_limit_bytes(Bt, Lqp, Lvp, H, A, I),
        ),
    )(hq_flat, hv_flat, mask_bias,
      packed["wq"], packed["wkv"], packed["wd"], packed["wi"], packed["wo"],
      packed["bqkv"], packed["bi"], packed["vecs"])

    x = out.reshape(B, Lqp, H)[:, :Lq, :]

    if reduction == "top":
        return x[:, 0, :]
    elif reduction == "mean":
        # Mirrors the PyTorch module exactly: the (Lv-length) attention_mask
        # is applied to the (Lq-length) output (meaningful when Lq == Lv), and
        # with attention_mask=None the unreduced tensor is returned.
        if attention_mask is not None:
            m = attention_mask.astype(jnp.float32)
            x = x * m[:, :, None]
            x = jnp.sum(x, axis=1) / jnp.sum(m, axis=1, keepdims=True)
        return x
    elif reduction is None:
        return x
    raise RuntimeError(f"cannot recognize reduction: {reduction}")


# ----------------------------------------------------------------------------
# Parameter init (deterministic, synthetic; (in, out) weight layout)
# ----------------------------------------------------------------------------
def init_layer_params(key, hidden_size, intermediate_size, all_head_size):
    ks = jax.random.split(key, 6)

    def lin(k, fan_in, fan_out):
        w = jax.random.normal(k, (fan_in, fan_out), jnp.float32) * 0.02
        b = jnp.zeros((1, fan_out), jnp.float32)
        return w, b

    wq, bq = lin(ks[0], hidden_size, all_head_size)
    wk, bk = lin(ks[1], hidden_size, all_head_size)
    wv, bv = lin(ks[2], hidden_size, all_head_size)
    wd, bd = lin(ks[3], all_head_size, hidden_size)
    wi, bi = lin(ks[4], hidden_size, intermediate_size)
    wo, bo = lin(ks[5], intermediate_size, hidden_size)
    return dict(
        wq=wq, bq=bq, wk=wk, bk=bk, wv=wv, bv=bv, wd=wd, bd=bd,
        g1=jnp.ones((1, hidden_size), jnp.float32),
        be1=jnp.zeros((1, hidden_size), jnp.float32),
        wi=wi, bi=bi, wo=wo, bo=bo,
        g2=jnp.ones((1, hidden_size), jnp.float32),
        be2=jnp.zeros((1, hidden_size), jnp.float32),
    )


def pack_params(layer_params, head_size):
    """Stack per-layer params (layer-leading); weights -> bf16; fold the
    1/sqrt(head_size) softmax scale into wq / bq."""
    bf = jnp.bfloat16
    scale = 1.0 / math.sqrt(head_size)
    return dict(
        wq=jnp.stack([p["wq"] * scale for p in layer_params]).astype(bf),
        wkv=jnp.stack([jnp.concatenate([p["wk"], p["wv"]], axis=1)
                       for p in layer_params]).astype(bf),
        wd=jnp.stack([p["wd"] for p in layer_params]).astype(bf),
        wi=jnp.stack([p["wi"] for p in layer_params]).astype(bf),
        wo=jnp.stack([p["wo"] for p in layer_params]).astype(bf),
        bqkv=jnp.stack([jnp.concatenate([p["bq"] * scale, p["bk"], p["bv"]],
                                        axis=1) for p in layer_params]),
        bi=jnp.stack([p["bi"] for p in layer_params]),
        vecs=jnp.stack([jnp.concatenate(
            [p["bd"], p["g1"], p["be1"], p["bo"], p["g2"], p["be2"]], axis=0)
            for p in layer_params]),
    )


# ----------------------------------------------------------------------------
# Pure-JAX f32 reference (mirrors the PyTorch forward, eval mode)
# ----------------------------------------------------------------------------
def reference_forward(hq, hv, attention_mask, layer_params, *,
                      num_heads, head_size, reduction="top"):
    B, Lv, _ = hv.shape
    mask_bias = ((1.0 - attention_mask) * -10000000.0 if attention_mask is not None
                 else jnp.zeros((B, Lv), jnp.float32))

    def ln(x, g, b):
        mu = jnp.mean(x, -1, keepdims=True)
        var = jnp.mean((x - mu) ** 2, -1, keepdims=True)
        return (x - mu) * jax.lax.rsqrt(var + 1e-5) * g + b

    x = hq
    nh, hd = num_heads, head_size
    for p in layer_params:
        q = x @ p["wq"] + p["bq"]
        k = hv @ p["wk"] + p["bk"]
        v = hv @ p["wv"] + p["bv"]
        Bq, Lq, Afull = q.shape
        q4 = q.reshape(Bq, Lq, nh, hd).transpose(0, 2, 1, 3)
        k4 = k.reshape(Bq, Lv, nh, hd).transpose(0, 2, 1, 3)
        v4 = v.reshape(Bq, Lv, nh, hd).transpose(0, 2, 1, 3)
        s = jnp.einsum('bhqd,bhkd->bhqk', q4, k4) / math.sqrt(hd)
        s = s + mask_bias[:, None, None, :]
        pr = jax.nn.softmax(s, axis=-1)
        ctx = jnp.einsum('bhqk,bhkd->bhqd', pr, v4)
        ctx = ctx.transpose(0, 2, 1, 3).reshape(Bq, Lq, Afull)
        attn = ln(ctx @ p["wd"] + p["bd"] + x, p["g1"], p["be1"])
        inter = jax.nn.gelu(attn @ p["wi"] + p["bi"], approximate=False)
        ffn = inter @ p["wo"] + p["bo"]
        x = ln(ffn + attn, p["g2"], p["be2"])
    if reduction == "top":
        return x[:, 0, :]
    return x


# ----------------------------------------------------------------------------
if __name__ == "__main__":
    # Config mirroring the PyTorch defaults.
    num_layers = 2
    hidden_size = 32
    intermediate_size = 4 * hidden_size                          # 128
    attention_head_size = hidden_size // 4                       # 8
    num_attention_heads = hidden_size // attention_head_size     # 4
    all_head_size = num_attention_heads * attention_head_size

    B, Lq, Lv = 2, 8, 8

    key = jax.random.PRNGKey(0)
    k_hq, k_hv, k_params = jax.random.split(key, 3)
    hidden_states_query = jax.random.normal(k_hq, (B, Lq, hidden_size), jnp.float32)
    hidden_states_value = jax.random.normal(k_hv, (B, Lv, hidden_size), jnp.float32)
    attention_mask = jnp.ones((B, Lv), jnp.float32)

    layer_keys = jax.random.split(k_params, num_layers)
    layer_params = [
        init_layer_params(layer_keys[i], hidden_size, intermediate_size,
                          all_head_size)
        for i in range(num_layers)
    ]
    packed = pack_params(layer_params, attention_head_size)

    out = multilayer_cross_transformer(
        hidden_states_query, hidden_states_value, attention_mask, packed,
        num_heads=num_attention_heads, head_size=attention_head_size,
        reduction="top")
    out = jax.block_until_ready(out)

    assert out.shape == (B, hidden_size), out.shape
    assert bool(jnp.all(jnp.isfinite(out)))

    # Check against the f32 reference (kernel uses bf16 matmul inputs).
    ref = reference_forward(hidden_states_query, hidden_states_value,
                            attention_mask, layer_params,
                            num_heads=num_attention_heads,
                            head_size=attention_head_size, reduction="top")
    err = float(jnp.max(jnp.abs(out - ref)))
    assert err < 0.1, f"mismatch vs f32 reference: {err}"

    print("KERNEL_OK")
</pallas_src>

<mosaic_0001>
module attributes {stable_mosaic.version = 11 : i64} {
  func.func @_fused_layers_kernel(%arg0: i32, %arg1: i32, %arg2: memref<16x32xf32, #tpu.memory_space<vmem>>, %arg3: memref<32x32xbf16, #tpu.memory_space<vmem>>, %arg4: memref<2x1x16xf32, #tpu.memory_space<vmem>>, %arg5: memref<1x32x32xbf16, #tpu.memory_space<vmem>>, %arg6: memref<1x32x64xbf16, #tpu.memory_space<vmem>>, %arg7: memref<1x32x32xbf16, #tpu.memory_space<vmem>>, %arg8: memref<1x32x128xbf16, #tpu.memory_space<vmem>>, %arg9: memref<1x128x32xbf16, #tpu.memory_space<vmem>>, %arg10: memref<1x1x96xf32, #tpu.memory_space<vmem>>, %arg11: memref<1x1x128xf32, #tpu.memory_space<vmem>>, %arg12: memref<1x6x32xf32, #tpu.memory_space<vmem>>, %arg13: memref<16x32xf32, #tpu.memory_space<vmem>>, %arg14: memref<16x32xf32, #tpu.memory_space<vmem>>) attributes {dimension_semantics = [#tpu.dimension_semantics<parallel>, #tpu.dimension_semantics<arbitrary>], iteration_bounds = array<i64: 1, 2>, scalar_prefetch = 0 : i64, scratch_operands = 1 : i64, tpu.core_type = #tpu.core_type<tc>, window_params = [{transform_indices = @transform_0, window_bounds = array<i64: 16, 32>}, {transform_indices = @transform_1, window_bounds = array<i64: 32, 32>}, {transform_indices = @transform_2, window_bounds = array<i64: 2, 1, 16>}, {transform_indices = @transform_3, window_bounds = array<i64: 1, 32, 32>}, {transform_indices = @transform_4, window_bounds = array<i64: 1, 32, 64>}, {transform_indices = @transform_5, window_bounds = array<i64: 1, 32, 32>}, {transform_indices = @transform_6, window_bounds = array<i64: 1, 32, 128>}, {transform_indices = @transform_7, window_bounds = array<i64: 1, 128, 32>}, {transform_indices = @transform_8, window_bounds = array<i64: 1, 1, 96>}, {transform_indices = @transform_9, window_bounds = array<i64: 1, 1, 128>}, {transform_indices = @transform_10, window_bounds = array<i64: 1, 6, 32>}, {transform_indices = @transform_11, window_bounds = array<i64: 16, 32>}]} {
    %c0_i32 = arith.constant 0 : i32
    %0 = arith.cmpi eq, %arg1, %c0_i32 : i32
    %1 = arith.extui %0 : i1 to i32
    %c0_i32_0 = arith.constant 0 : i32
    %2 = arith.cmpi ne, %1, %c0_i32_0 : i32
    scf.if %2 {
      %c0_70 = arith.constant 0 : index
      %c0_71 = arith.constant 0 : index
      %204 = vector.load %arg2[%c0_70, %c0_71] : memref<16x32xf32, #tpu.memory_space<vmem>>, vector<16x32xf32>
      %c0_72 = arith.constant 0 : index
      %c0_73 = arith.constant 0 : index
      %205 = vector.load %arg14[%c0_72, %c0_73] : memref<16x32xf32, #tpu.memory_space<vmem>>, vector<16x32xf32>
      tpu.vector_store %arg14[%c0_72, %c0_73], %204 {strides = array<i32>} : memref<16x32xf32, #tpu.memory_space<vmem>>, vector<16x32xf32>,
    } else {
    }
    %c0 = arith.constant 0 : index
    %c0_1 = arith.constant 0 : index
    %3 = vector.load %arg14[%c0, %c0_1] : memref<16x32xf32, #tpu.memory_space<vmem>>, vector<16x32xf32>
    %c0_2 = arith.constant 0 : index
    %c0_3 = arith.constant 0 : index
    %4 = vector.load %arg3[%c0_2, %c0_3] : memref<32x32xbf16, #tpu.memory_space<vmem>>, vector<32x32xbf16>
    %c0_4 = arith.constant 0 : index
    %c0_5 = arith.constant 0 : index
    %c0_6 = arith.constant 0 : index
    %5 = vector.load %arg4[%c0_4, %c0_5, %c0_6] : memref<2x1x16xf32, #tpu.memory_space<vmem>>, vector<2x1x16xf32>
    %c0_7 = arith.constant 0 : index
    %c0_8 = arith.constant 0 : index
    %c0_9 = arith.constant 0 : index
    %6 = vector.load %arg10[%c0_7, %c0_8, %c0_9] : memref<1x1x96xf32, #tpu.memory_space<vmem>>, vector<1x1x96xf32>
    %7 = vector.shape_cast %6 : vector<1x1x96xf32> to vector<1x96xf32>
    %c0_10 = arith.constant 0 : index
    %c0_11 = arith.constant 0 : index
    %c0_12 = arith.constant 0 : index
    %8 = vector.load %arg12[%c0_10, %c0_11, %c0_12] : memref<1x6x32xf32, #tpu.memory_space<vmem>>, vector<1x6x32xf32>
    %9 = vector.shape_cast %8 : vector<1x6x32xf32> to vector<6x32xf32>
    %10 = vector.extract_strided_slice %9 {offsets = [0, 0], sizes = [1, 32], strides = [1, 1]} : vector<6x32xf32> to vector<1x32xf32>
    %11 = vector.extract_strided_slice %9 {offsets = [1, 0], sizes = [1, 32], strides = [1, 1]} : vector<6x32xf32> to vector<1x32xf32>
    %12 = vector.extract_strided_slice %9 {offsets = [2, 0], sizes = [1, 32], strides = [1, 1]} : vector<6x32xf32> to vector<1x32xf32>
    %13 = vector.extract_strided_slice %9 {offsets = [3, 0], sizes = [1, 32], strides = [1, 1]} : vector<6x32xf32> to vector<1x32xf32>
    %14 = vector.extract_strided_slice %9 {offsets = [4, 0], sizes = [1, 32], strides = [1, 1]} : vector<6x32xf32> to vector<1x32xf32>
    %15 = vector.extract_strided_slice %9 {offsets = [5, 0], sizes = [1, 32], strides = [1, 1]} : vector<6x32xf32> to vector<1x32xf32>
    %16 = arith.truncf %3 : vector<16x32xf32> to vector<16x32xbf16>
    %c0_13 = arith.constant 0 : index
    %c0_14 = arith.constant 0 : index
    %c0_15 = arith.constant 0 : index
    %17 = vector.load %arg5[%c0_13, %c0_14, %c0_15] : memref<1x32x32xbf16, #tpu.memory_space<vmem>>, vector<1x32x32xbf16>
    %18 = vector.shape_cast %17 : vector<1x32x32xbf16> to vector<32x32xbf16>
    %cst = arith.constant dense<0.000000e+00> : vector<16x32xf32>
    %19 = tpu.matmul %16, %18, %cst {dimension_numbers = #tpu.dot_dimension_numbers<[1], [0], [0], [1], [0, 0, 1, 1], [], []>} : vector<16x32xbf16>, vector<32x32xbf16>, vector<16x32xf32> -> vector<16x32xf32>
    %20 = vector.extract_strided_slice %7 {offsets = [0, 0], sizes = [1, 32], strides = [1, 1]} : vector<1x96xf32> to vector<1x32xf32>
    %21 = vector.broadcast %20 : vector<1x32xf32> to vector<16x32xf32>
    %22 = arith.addf %19, %21 : vector<16x32xf32>
    %c0_16 = arith.constant 0 : index
    %c0_17 = arith.constant 0 : index
    %c0_18 = arith.constant 0 : index
    %23 = vector.load %arg6[%c0_16, %c0_17, %c0_18] : memref<1x32x64xbf16, #tpu.memory_space<vmem>>, vector<1x32x64xbf16>
    %24 = vector.shape_cast %23 : vector<1x32x64xbf16> to vector<32x64xbf16>
    %cst_19 = arith.constant dense<0.000000e+00> : vector<32x64xf32>
    %25 = tpu.matmul %4, %24, %cst_19 {dimension_numbers = #tpu.dot_dimension_numbers<[1], [0], [0], [1], [0, 0, 1, 1], [], []>} : vector<32x32xbf16>, vector<32x64xbf16>, vector<32x64xf32> -> vector<32x64xf32>
    %26 = vector.extract_strided_slice %7 {offsets = [0, 32], sizes = [1, 64], strides = [1, 1]} : vector<1x96xf32> to vector<1x64xf32>
    %27 = vector.broadcast %26 : vector<1x64xf32> to vector<32x64xf32>
    %28 = arith.addf %25, %27 : vector<32x64xf32>
    %29 = vector.shape_cast %22 : vector<16x32xf32> to vector<2x8x32xf32>
    %30 = arith.truncf %29 : vector<2x8x32xf32> to vector<2x8x32xbf16>
    %31 = vector.extract_strided_slice %28 {offsets = [0, 0], sizes = [32, 32], strides = [1, 1]} : vector<32x64xf32> to vector<32x32xf32>
    %32 = vector.shape_cast %31 : vector<32x32xf32> to vector<2x16x32xf32>
    %33 = arith.truncf %32 : vector<2x16x32xf32> to vector<2x16x32xbf16>
    %34 = vector.extract_strided_slice %28 {offsets = [0, 32], sizes = [32, 32], strides = [1, 1]} : vector<32x64xf32> to vector<32x32xf32>
    %35 = vector.shape_cast %34 : vector<32x32xf32> to vector<2x16x32xf32>
    %36 = arith.truncf %35 : vector<2x16x32xf32> to vector<2x16x32xbf16>
    %c0_20 = arith.constant 0 : index
    %c0_21 = arith.constant 0 : index
    %c0_22 = arith.constant 0 : index
    %37 = vector.load %arg7[%c0_20, %c0_21, %c0_22] : memref<1x32x32xbf16, #tpu.memory_space<vmem>>, vector<1x32x32xbf16>
    %38 = vector.shape_cast %37 : vector<1x32x32xbf16> to vector<32x32xbf16>
    %39 = vector.extract_strided_slice %30 {offsets = [0, 0, 0], sizes = [2, 8, 8], strides = [1, 1, 1]} : vector<2x8x32xbf16> to vector<2x8x8xbf16>
    %40 = vector.extract_strided_slice %33 {offsets = [0, 0, 0], sizes = [2, 16, 8], strides = [1, 1, 1]} : vector<2x16x32xbf16> to vector<2x16x8xbf16>
    %41 = vector.extract_strided_slice %36 {offsets = [0, 0, 0], sizes = [2, 16, 8], strides = [1, 1, 1]} : vector<2x16x32xbf16> to vector<2x16x8xbf16>
    "tpu.trace_start"() <{level = 10 : i32, message = "bqd,bkd->bqk"}> : () -> ()
    %cst_23 = arith.constant dense<0.000000e+00> : vector<2x8x16xf32>
    %42 = tpu.matmul %39, %40, %cst_23 {dimension_numbers = #tpu.dot_dimension_numbers<[2], [2], [1], [1], [0, 0, 0, 1, 1, 1], [0], [0]>} : vector<2x8x8xbf16>, vector<2x16x8xbf16>, vector<2x8x16xf32> -> vector<2x8x16xf32>
    "tpu.trace_stop"() : () -> ()
    %43 = vector.broadcast %5 : vector<2x1x16xf32> to vector<2x8x16xf32>
    %44 = arith.addf %42, %43 : vector<2x8x16xf32>
    %cst_24 = arith.constant dense<0xFF800000> : vector<2x8xf32>
    %45 = vector.multi_reduction <maximumf>, %44, %cst_24 [2] : vector<2x8x16xf32> to vector<2x8xf32>
    %46 = vector.shape_cast %45 : vector<2x8xf32> to vector<2x8x1xf32>
    %47 = vector.broadcast %46 : vector<2x8x1xf32> to vector<2x8x16xf32>
    %48 = arith.subf %44, %47 : vector<2x8x16xf32>
    %49 = math.exp %48 : vector<2x8x16xf32>
    %cst_25 = arith.constant dense<0.000000e+00> : vector<2x8xf32>
    %50 = vector.multi_reduction <add>, %49, %cst_25 [2] : vector<2x8x16xf32> to vector<2x8xf32>
    %51 = vector.shape_cast %50 : vector<2x8xf32> to vector<2x8x1xf32>
    %52 = tpu.reciprocal %51 {approx = true} : vector<2x8x1xf32> -> vector<2x8x1xf32>
    %53 = vector.broadcast %52 : vector<2x8x1xf32> to vector<2x8x16xf32>
    %54 = arith.mulf %49, %53 : vector<2x8x16xf32>
    %55 = arith.truncf %54 : vector<2x8x16xf32> to vector<2x8x16xbf16>
    "tpu.trace_start"() <{level = 10 : i32, message = "bqk,bkd->bqd"}> : () -> ()
    %cst_26 = arith.constant dense<0.000000e+00> : vector<2x8x8xf32>
    %56 = tpu.matmul %55, %41, %cst_26 {dimension_numbers = #tpu.dot_dimension_numbers<[2], [1], [1], [2], [0, 0, 0, 1, 1, 2], [0], [0]>} : vector<2x8x16xbf16>, vector<2x16x8xbf16>, vector<2x8x8xf32> -> vector<2x8x8xf32>
    "tpu.trace_stop"() : () -> ()
    %57 = vector.shape_cast %56 : vector<2x8x8xf32> to vector<16x8xf32>
    %58 = arith.truncf %57 : vector<16x8xf32> to vector<16x8xbf16>
    %59 = vector.extract_strided_slice %38 {offsets = [0, 0], sizes = [8, 32], strides = [1, 1]} : vector<32x32xbf16> to vector<8x32xbf16>
    %cst_27 = arith.constant dense<0.000000e+00> : vector<16x32xf32>
    %60 = tpu.matmul %58, %59, %cst_27 {dimension_numbers = #tpu.dot_dimension_numbers<[1], [0], [0], [1], [0, 0, 1, 1], [], []>} : vector<16x8xbf16>, vector<8x32xbf16>, vector<16x32xf32> -> vector<16x32xf32>
    %61 = vector.extract_strided_slice %30 {offsets = [0, 0, 8], sizes = [2, 8, 8], strides = [1, 1, 1]} : vector<2x8x32xbf16> to vector<2x8x8xbf16>
    %62 = vector.extract_strided_slice %33 {offsets = [0, 0, 8], sizes = [2, 16, 8], strides = [1, 1, 1]} : vector<2x16x32xbf16> to vector<2x16x8xbf16>
    %63 = vector.extract_strided_slice %36 {offsets = [0, 0, 8], sizes = [2, 16, 8], strides = [1, 1, 1]} : vector<2x16x32xbf16> to vector<2x16x8xbf16>
    "tpu.trace_start"() <{level = 10 : i32, message = "bqd,bkd->bqk"}> : () -> ()
    %cst_28 = arith.constant dense<0.000000e+00> : vector<2x8x16xf32>
    %64 = tpu.matmul %61, %62, %cst_28 {dimension_numbers = #tpu.dot_dimension_numbers<[2], [2], [1], [1], [0, 0, 0, 1, 1, 1], [0], [0]>} : vector<2x8x8xbf16>, vector<2x16x8xbf16>, vector<2x8x16xf32> -> vector<2x8x16xf32>
    "tpu.trace_stop"() : () -> ()
    %65 = vector.broadcast %5 : vector<2x1x16xf32> to vector<2x8x16xf32>
    %66 = arith.addf %64, %65 : vector<2x8x16xf32>
    %cst_29 = arith.constant dense<0xFF800000> : vector<2x8xf32>
    %67 = vector.multi_reduction <maximumf>, %66, %cst_29 [2] : vector<2x8x16xf32> to vector<2x8xf32>
    %68 = vector.shape_cast %67 : vector<2x8xf32> to vector<2x8x1xf32>
    %69 = vector.broadcast %68 : vector<2x8x1xf32> to vector<2x8x16xf32>
    %70 = arith.subf %66, %69 : vector<2x8x16xf32>
    %71 = math.exp %70 : vector<2x8x16xf32>
    %cst_30 = arith.constant dense<0.000000e+00> : vector<2x8xf32>
    %72 = vector.multi_reduction <add>, %71, %cst_30 [2] : vector<2x8x16xf32> to vector<2x8xf32>
    %73 = vector.shape_cast %72 : vector<2x8xf32> to vector<2x8x1xf32>
    %74 = tpu.reciprocal %73 {approx = true} : vector<2x8x1xf32> -> vector<2x8x1xf32>
    %75 = vector.broadcast %74 : vector<2x8x1xf32> to vector<2x8x16xf32>
    %76 = arith.mulf %71, %75 : vector<2x8x16xf32>
    %77 = arith.truncf %76 : vector<2x8x16xf32> to vector<2x8x16xbf16>
    "tpu.trace_start"() <{level = 10 : i32, message = "bqk,bkd->bqd"}> : () -> ()
    %cst_31 = arith.constant dense<0.000000e+00> : vector<2x8x8xf32>
    %78 = tpu.matmul %77, %63, %cst_31 {dimension_numbers = #tpu.dot_dimension_numbers<[2], [1], [1], [2], [0, 0, 0, 1, 1, 2], [0], [0]>} : vector<2x8x16xbf16>, vector<2x16x8xbf16>, vector<2x8x8xf32> -> vector<2x8x8xf32>
    "tpu.trace_stop"() : () -> ()
    %79 = vector.shape_cast %78 : vector<2x8x8xf32> to vector<16x8xf32>
    %80 = arith.truncf %79 : vector<16x8xf32> to vector<16x8xbf16>
    %81 = vector.extract_strided_slice %38 {offsets = [8, 0], sizes = [8, 32], strides = [1, 1]} : vector<32x32xbf16> to vector<8x32xbf16>
    %cst_32 = arith.constant dense<0.000000e+00> : vector<16x32xf32>
    %82 = tpu.matmul %80, %81, %cst_32 {dimension_numbers = #tpu.dot_dimension_numbers<[1], [0], [0], [1], [0, 0, 1, 1], [], []>} : vector<16x8xbf16>, vector<8x32xbf16>, vector<16x32xf32> -> vector<16x32xf32>
    %83 = arith.addf %60, %82 : vector<16x32xf32>
    %84 = vector.extract_strided_slice %30 {offsets = [0, 0, 16], sizes = [2, 8, 8], strides = [1, 1, 1]} : vector<2x8x32xbf16> to vector<2x8x8xbf16>
    %85 = vector.extract_strided_slice %33 {offsets = [0, 0, 16], sizes = [2, 16, 8], strides = [1, 1, 1]} : vector<2x16x32xbf16> to vector<2x16x8xbf16>
    %86 = vector.extract_strided_slice %36 {offsets = [0, 0, 16], sizes = [2, 16, 8], strides = [1, 1, 1]} : vector<2x16x32xbf16> to vector<2x16x8xbf16>
    "tpu.trace_start"() <{level = 10 : i32, message = "bqd,bkd->bqk"}> : () -> ()
    %cst_33 = arith.constant dense<0.000000e+00> : vector<2x8x16xf32>
    %87 = tpu.matmul %84, %85, %cst_33 {dimension_numbers = #tpu.dot_dimension_numbers<[2], [2], [1], [1], [0, 0, 0, 1, 1, 1], [0], [0]>} : vector<2x8x8xbf16>, vector<2x16x8xbf16>, vector<2x8x16xf32> -> vector<2x8x16xf32>
    "tpu.trace_stop"() : () -> ()
    %88 = vector.broadcast %5 : vector<2x1x16xf32> to vector<2x8x16xf32>
    %89 = arith.addf %87, %88 : vector<2x8x16xf32>
    %cst_34 = arith.constant dense<0xFF800000> : vector<2x8xf32>
    %90 = vector.multi_reduction <maximumf>, %89, %cst_34 [2] : vector<2x8x16xf32> to vector<2x8xf32>
    %91 = vector.shape_cast %90 : vector<2x8xf32> to vector<2x8x1xf32>
    %92 = vector.broadcast %91 : vector<2x8x1xf32> to vector<2x8x16xf32>
    %93 = arith.subf %89, %92 : vector<2x8x16xf32>
    %94 = math.exp %93 : vector<2x8x16xf32>
    %cst_35 = arith.constant dense<0.000000e+00> : vector<2x8xf32>
    %95 = vector.multi_reduction <add>, %94, %cst_35 [2] : vector<2x8x16xf32> to vector<2x8xf32>
    %96 = vector.shape_cast %95 : vector<2x8xf32> to vector<2x8x1xf32>
    %97 = tpu.reciprocal %96 {approx = true} : vector<2x8x1xf32> -> vector<2x8x1xf32>
    %98 = vector.broadcast %97 : vector<2x8x1xf32> to vector<2x8x16xf32>
    %99 = arith.mulf %94, %98 : vector<2x8x16xf32>
    %100 = arith.truncf %99 : vector<2x8x16xf32> to vector<2x8x16xbf16>
    "tpu.trace_start"() <{level = 10 : i32, message = "bqk,bkd->bqd"}> : () -> ()
    %cst_36 = arith.constant dense<0.000000e+00> : vector<2x8x8xf32>
    %101 = tpu.matmul %100, %86, %cst_36 {dimension_numbers = #tpu.dot_dimension_numbers<[2], [1], [1], [2], [0, 0, 0, 1, 1, 2], [0], [0]>} : vector<2x8x16xbf16>, vector<2x16x8xbf16>, vector<2x8x8xf32> -> vector<2x8x8xf32>
    "tpu.trace_stop"() : () -> ()
    %102 = vector.shape_cast %101 : vector<2x8x8xf32> to vector<16x8xf32>
    %103 = arith.truncf %102 : vector<16x8xf32> to vector<16x8xbf16>
    %104 = vector.extract_strided_slice %38 {offsets = [16, 0], sizes = [8, 32], strides = [1, 1]} : vector<32x32xbf16> to vector<8x32xbf16>
    %cst_37 = arith.constant dense<0.000000e+00> : vector<16x32xf32>
    %105 = tpu.matmul %103, %104, %cst_37 {dimension_numbers = #tpu.dot_dimension_numbers<[1], [0], [0], [1], [0, 0, 1, 1], [], []>} : vector<16x8xbf16>, vector<8x32xbf16>, vector<16x32xf32> -> vector<16x32xf32>
    %106 = arith.addf %83, %105 : vector<16x32xf32>
    %107 = vector.extract_strided_slice %30 {offsets = [0, 0, 24], sizes = [2, 8, 8], strides = [1, 1, 1]} : vector<2x8x32xbf16> to vector<2x8x8xbf16>
    %108 = vector.extract_strided_slice %33 {offsets = [0, 0, 24], sizes = [2, 16, 8], strides = [1, 1, 1]} : vector<2x16x32xbf16> to vector<2x16x8xbf16>
    %109 = vector.extract_strided_slice %36 {offsets = [0, 0, 24], sizes = [2, 16, 8], strides = [1, 1, 1]} : vector<2x16x32xbf16> to vector<2x16x8xbf16>
    "tpu.trace_start"() <{level = 10 : i32, message = "bqd,bkd->bqk"}> : () -> ()
    %cst_38 = arith.constant dense<0.000000e+00> : vector<2x8x16xf32>
    %110 = tpu.matmul %107, %108, %cst_38 {dimension_numbers = #tpu.dot_dimension_numbers<[2], [2], [1], [1], [0, 0, 0, 1, 1, 1], [0], [0]>} : vector<2x8x8xbf16>, vector<2x16x8xbf16>, vector<2x8x16xf32> -> vector<2x8x16xf32>
    "tpu.trace_stop"() : () -> ()
    %111 = vector.broadcast %5 : vector<2x1x16xf32> to vector<2x8x16xf32>
    %112 = arith.addf %110, %111 : vector<2x8x16xf32>
    %cst_39 = arith.constant dense<0xFF800000> : vector<2x8xf32>
    %113 = vector.multi_reduction <maximumf>, %112, %cst_39 [2] : vector<2x8x16xf32> to vector<2x8xf32>
    %114 = vector.shape_cast %113 : vector<2x8xf32> to vector<2x8x1xf32>
    %115 = vector.broadcast %114 : vector<2x8x1xf32> to vector<2x8x16xf32>
    %116 = arith.subf %112, %115 : vector<2x8x16xf32>
    %117 = math.exp %116 : vector<2x8x16xf32>
    %cst_40 = arith.constant dense<0.000000e+00> : vector<2x8xf32>
    %118 = vector.multi_reduction <add>, %117, %cst_40 [2] : vector<2x8x16xf32> to vector<2x8xf32>
    %119 = vector.shape_cast %118 : vector<2x8xf32> to vector<2x8x1xf32>
    %120 = tpu.reciprocal %119 {approx = true} : vector<2x8x1xf32> -> vector<2x8x1xf32>
    %121 = vector.broadcast %120 : vector<2x8x1xf32> to vector<2x8x16xf32>
    %122 = arith.mulf %117, %121 : vector<2x8x16xf32>
    %123 = arith.truncf %122 : vector<2x8x16xf32> to vector<2x8x16xbf16>
    "tpu.trace_start"() <{level = 10 : i32, message = "bqk,bkd->bqd"}> : () -> ()
    %cst_41 = arith.constant dense<0.000000e+00> : vector<2x8x8xf32>
    %124 = tpu.matmul %123, %109, %cst_41 {dimension_numbers = #tpu.dot_dimension_numbers<[2], [1], [1], [2], [0, 0, 0, 1, 1, 2], [0], [0]>} : vector<2x8x16xbf16>, vector<2x16x8xbf16>, vector<2x8x8xf32> -> vector<2x8x8xf32>
    "tpu.trace_stop"() : () -> ()
    %125 = vector.shape_cast %124 : vector<2x8x8xf32> to vector<16x8xf32>
    %126 = arith.truncf %125 : vector<16x8xf32> to vector<16x8xbf16>
    %127 = vector.extract_strided_slice %38 {offsets = [24, 0], sizes = [8, 32], strides = [1, 1]} : vector<32x32xbf16> to vector<8x32xbf16>
    %cst_42 = arith.constant dense<0.000000e+00> : vector<16x32xf32>
    %128 = tpu.matmul %126, %127, %cst_42 {dimension_numbers = #tpu.dot_dimension_numbers<[1], [0], [0], [1], [0, 0, 1, 1], [], []>} : vector<16x8xbf16>, vector<8x32xbf16>, vector<16x32xf32> -> vector<16x32xf32>
    %129 = arith.addf %106, %128 : vector<16x32xf32>
    %130 = vector.broadcast %10 : vector<1x32xf32> to vector<16x32xf32>
    %131 = arith.addf %129, %130 : vector<16x32xf32>
    %132 = arith.addf %131, %3 : vector<16x32xf32>
    %cst_43 = arith.constant dense<0.000000e+00> : vector<16xf32>
    %133 = vector.multi_reduction <add>, %132, %cst_43 [1] : vector<16x32xf32> to vector<16xf32>
    %134 = vector.shape_cast %133 : vector<16xf32> to vector<16x1xf32>
    %cst_44 = arith.constant 3.200000e+01 : f32
    %135 = vector.broadcast %cst_44 : f32 to vector<16x1xf32>
    %136 = arith.divf %134, %135 : vector<16x1xf32>
    %137 = vector.broadcast %136 : vector<16x1xf32> to vector<16x32xf32>
    %138 = arith.subf %132, %137 : vector<16x32xf32>
    %139 = arith.mulf %138, %138 : vector<16x32xf32>
    %cst_45 = arith.constant dense<0.000000e+00> : vector<16xf32>
    %140 = vector.multi_reduction <add>, %139, %cst_45 [1] : vector<16x32xf32> to vector<16xf32>
    %141 = vector.shape_cast %140 : vector<16xf32> to vector<16x1xf32>
    %cst_46 = arith.constant 3.200000e+01 : f32
    %142 = vector.broadcast %cst_46 : f32 to vector<16x1xf32>
    %143 = arith.divf %141, %142 : vector<16x1xf32>
    %144 = vector.broadcast %136 : vector<16x1xf32> to vector<16x32xf32>
    %145 = arith.subf %132, %144 : vector<16x32xf32>
    %cst_47 = arith.constant 9.99999974E-6 : f32
    %146 = vector.broadcast %cst_47 : f32 to vector<16x1xf32>
    %147 = arith.addf %143, %146 : vector<16x1xf32>
    %148 = math.rsqrt %147 : vector<16x1xf32>
    %149 = vector.broadcast %148 : vector<16x1xf32> to vector<16x32xf32>
    %150 = arith.mulf %145, %149 : vector<16x32xf32>
    %151 = vector.broadcast %11 : vector<1x32xf32> to vector<16x32xf32>
    %152 = arith.mulf %150, %151 : vector<16x32xf32>
    %153 = vector.broadcast %12 : vector<1x32xf32> to vector<16x32xf32>
    %154 = arith.addf %152, %153 : vector<16x32xf32>
    %155 = arith.truncf %154 : vector<16x32xf32> to vector<16x32xbf16>
    %c0_48 = arith.constant 0 : index
    %c0_49 = arith.constant 0 : index
    %c0_50 = arith.constant 0 : index
    %156 = vector.load %arg8[%c0_48, %c0_49, %c0_50] : memref<1x32x128xbf16, #tpu.memory_space<vmem>>, vector<1x32x128xbf16>
    %157 = vector.shape_cast %156 : vector<1x32x128xbf16> to vector<32x128xbf16>
    %cst_51 = arith.constant dense<0.000000e+00> : vector<16x128xf32>
    %158 = tpu.matmul %155, %157, %cst_51 {dimension_numbers = #tpu.dot_dimension_numbers<[1], [0], [0], [1], [0, 0, 1, 1], [], []>} : vector<16x32xbf16>, vector<32x128xbf16>, vector<16x128xf32> -> vector<16x128xf32>
    %c0_52 = arith.constant 0 : index
    %c0_53 = arith.constant 0 : index
    %c0_54 = arith.constant 0 : index
    %159 = vector.load %arg11[%c0_52, %c0_53, %c0_54] : memref<1x1x128xf32, #tpu.memory_space<vmem>>, vector<1x1x128xf32>
    %160 = vector.shape_cast %159 : vector<1x1x128xf32> to vector<1x128xf32>
    %161 = vector.broadcast %160 : vector<1x128xf32> to vector<16x128xf32>
    %162 = arith.addf %158, %161 : vector<16x128xf32>
    %cst_55 = arith.constant 5.000000e-01 : f32
    %163 = vector.broadcast %cst_55 : f32 to vector<16x128xf32>
    %164 = arith.mulf %163, %162 : vector<16x128xf32>
    %cst_56 = arith.constant 0.707106769 : f32
    %165 = vector.broadcast %cst_56 : f32 to vector<16x128xf32>
    %166 = arith.mulf %162, %165 : vector<16x128xf32>
    %167 = math.erf %166 : vector<16x128xf32>
    %cst_57 = arith.constant 1.000000e+00 : f32
    %168 = vector.broadcast %cst_57 : f32 to vector<16x128xf32>
    %169 = arith.addf %168, %167 : vector<16x128xf32>
    %170 = arith.mulf %164, %169 : vector<16x128xf32>
    %171 = arith.truncf %170 : vector<16x128xf32> to vector<16x128xbf16>
    %c0_58 = arith.constant 0 : index
    %c0_59 = arith.constant 0 : index
    %c0_60 = arith.constant 0 : index
    %172 = vector.load %arg9[%c0_58, %c0_59, %c0_60] : memref<1x128x32xbf16, #tpu.memory_space<vmem>>, vector<1x128x32xbf16>
    %173 = vector.shape_cast %172 : vector<1x128x32xbf16> to vector<128x32xbf16>
    %cst_61 = arith.constant dense<0.000000e+00> : vector<16x32xf32>
    %174 = tpu.matmul %171, %173, %cst_61 {dimension_numbers = #tpu.dot_dimension_numbers<[1], [0], [0], [1], [0, 0, 1, 1], [], []>} : vector<16x128xbf16>, vector<128x32xbf16>, vector<16x32xf32> -> vector<16x32xf32>
    %175 = vector.broadcast %13 : vector<1x32xf32> to vector<16x32xf32>
    %176 = arith.addf %174, %175 : vector<16x32xf32>
    %177 = arith.addf %176, %154 : vector<16x32xf32>
    %cst_62 = arith.constant dense<0.000000e+00> : vector<16xf32>
    %178 = vector.multi_reduction <add>, %177, %cst_62 [1] : vector<16x32xf32> to vector<16xf32>
    %179 = vector.shape_cast %178 : vector<16xf32> to vector<16x1xf32>
    %cst_63 = arith.constant 3.200000e+01 : f32
    %180 = vector.broadcast %cst_63 : f32 to vector<16x1xf32>
    %181 = arith.divf %179, %180 : vector<16x1xf32>
    %182 = vector.broadcast %181 : vector<16x1xf32> to vector<16x32xf32>
    %183 = arith.subf %177, %182 : vector<16x32xf32>
    %184 = arith.mulf %183, %183 : vector<16x32xf32>
    %cst_64 = arith.constant dense<0.000000e+00> : vector<16xf32>
    %185 = vector.multi_reduction <add>, %184, %cst_64 [1] : vector<16x32xf32> to vector<16xf32>
    %186 = vector.shape_cast %185 : vector<16xf32> to vector<16x1xf32>
    %cst_65 = arith.constant 3.200000e+01 : f32
    %187 = vector.broadcast %cst_65 : f32 to vector<16x1xf32>
    %188 = arith.divf %186, %187 : vector<16x1xf32>
    %189 = vector.broadcast %181 : vector<16x1xf32> to vector<16x32xf32>
    %190 = arith.subf %177, %189 : vector<16x32xf32>
    %cst_66 = arith.constant 9.99999974E-6 : f32
    %191 = vector.broadcast %cst_66 : f32 to vector<16x1xf32>
    %192 = arith.addf %188, %191 : vector<16x1xf32>
    %193 = math.rsqrt %192 : vector<16x1xf32>
    %194 = vector.broadcast %193 : vector<16x1xf32> to vector<16x32xf32>
    %195 = arith.mulf %190, %194 : vector<16x32xf32>
    %196 = vector.broadcast %14 : vector<1x32xf32> to vector<16x32xf32>
    %197 = arith.mulf %195, %196 : vector<16x32xf32>
    %198 = vector.broadcast %15 : vector<1x32xf32> to vector<16x32xf32>
    %199 = arith.addf %197, %198 : vector<16x32xf32>
    %c0_67 = arith.constant 0 : index
    %c0_68 = arith.constant 0 : index
    %200 = vector.load %arg14[%c0_67, %c0_68] : memref<16x32xf32, #tpu.memory_space<vmem>>, vector<16x32xf32>
    tpu.vector_store %arg14[%c0_67, %c0_68], %199 {strides = array<i32>} : memref<16x32xf32, #tpu.memory_space<vmem>>, vector<16x32xf32>,
    %c1_i32 = arith.constant 1 : i32
    %201 = arith.cmpi eq, %arg1, %c1_i32 : i32
    %202 = arith.extui %201 : i1 to i32
    %c0_i32_69 = arith.constant 0 : i32
    %203 = arith.cmpi ne, %202, %c0_i32_69 : i32
    scf.if %203 {
      %c0_70 = arith.constant 0 : index
      %c0_71 = arith.constant 0 : index
      %204 = vector.load %arg13[%c0_70, %c0_71] : memref<16x32xf32, #tpu.memory_space<vmem>>, vector<16x32xf32>
      tpu.vector_store %arg13[%c0_70, %c0_71], %199 {strides = array<i32>} : memref<16x32xf32, #tpu.memory_space<vmem>>, vector<16x32xf32>,
    } else {
    }
    return
  }
  func.func @transform_0(%arg0: i32, %arg1: i32) -> (i32, i32) {
    %c0_i32 = arith.constant 0 : i32
    %c0_i32_0 = arith.constant 0 : i32
    return %arg0, %c0_i32 : i32, i32
  }
  func.func @transform_1(%arg0: i32, %arg1: i32) -> (i32, i32) {
    %c0_i32 = arith.constant 0 : i32
    %c0_i32_0 = arith.constant 0 : i32
    return %arg0, %c0_i32 : i32, i32
  }
  func.func @transform_2(%arg0: i32, %arg1: i32) -> (i32, i32, i32) {
    %c0_i32 = arith.constant 0 : i32
    %c0_i32_0 = arith.constant 0 : i32
    %c0_i32_1 = arith.constant 0 : i32
    return %arg0, %c0_i32, %c0_i32_0 : i32, i32, i32
  }
  func.func @transform_3(%arg0: i32, %arg1: i32) -> (i32, i32, i32) {
    %c0_i32 = arith.constant 0 : i32
    %c0_i32_0 = arith.constant 0 : i32
    %c0_i32_1 = arith.constant 0 : i32
    return %arg1, %c0_i32, %c0_i32_0 : i32, i32, i32
  }
  func.func @transform_4(%arg0: i32, %arg1: i32) -> (i32, i32, i32) {
    %c0_i32 = arith.constant 0 : i32
    %c0_i32_0 = arith.constant 0 : i32
    %c0_i32_1 = arith.constant 0 : i32
    return %arg1, %c0_i32, %c0_i32_0 : i32, i32, i32
  }
  func.func @transform_5(%arg0: i32, %arg1: i32) -> (i32, i32, i32) {
    %c0_i32 = arith.constant 0 : i32
    %c0_i32_0 = arith.constant 0 : i32
    %c0_i32_1 = arith.constant 0 : i32
    return %arg1, %c0_i32, %c0_i32_0 : i32, i32, i32
  }
  func.func @transform_6(%arg0: i32, %arg1: i32) -> (i32, i32, i32) {
    %c0_i32 = arith.constant 0 : i32
    %c0_i32_0 = arith.constant 0 : i32
    %c0_i32_1 = arith.constant 0 : i32
    return %arg1, %c0_i32, %c0_i32_0 : i32, i32, i32
  }
  func.func @transform_7(%arg0: i32, %arg1: i32) -> (i32, i32, i32) {
    %c0_i32 = arith.constant 0 : i32
    %c0_i32_0 = arith.constant 0 : i32
    %c0_i32_1 = arith.constant 0 : i32
    return %arg1, %c0_i32, %c0_i32_0 : i32, i32, i32
  }
  func.func @transform_8(%arg0: i32, %arg1: i32) -> (i32, i32, i32) {
    %c0_i32 = arith.constant 0 : i32
    %c0_i32_0 = arith.constant 0 : i32
    %c0_i32_1 = arith.constant 0 : i32
    return %arg1, %c0_i32, %c0_i32_0 : i32, i32, i32
  }
  func.func @transform_9(%arg0: i32, %arg1: i32) -> (i32, i32, i32) {
    %c0_i32 = arith.constant 0 : i32
    %c0_i32_0 = arith.constant 0 : i32
    %c0_i32_1 = arith.constant 0 : i32
    return %arg1, %c0_i32, %c0_i32_0 : i32, i32, i32
  }
  func.func @transform_10(%arg0: i32, %arg1: i32) -> (i32, i32, i32) {
    %c0_i32 = arith.constant 0 : i32
    %c0_i32_0 = arith.constant 0 : i32
    %c0_i32_1 = arith.constant 0 : i32
    return %arg1, %c0_i32, %c0_i32_0 : i32, i32, i32
  }
  func.func @transform_11(%arg0: i32, %arg1: i32) -> (i32, i32) {
    %c0_i32 = arith.constant 0 : i32
    %c0_i32_0 = arith.constant 0 : i32
    return %arg0, %c0_i32 : i32, i32
  }
}

</mosaic_0001>

<bundles_post_ra>
// kernel: tpu_custom_call.1
= control target key start
LH: loop header
LB: loop body
LE: loop exit
PB: predicated region body
PF: predicated region fallthrough
CT: control target
= control target key end

     0   :  { %s3461_s0 = inlined_call_operand.vmem [shape: f32[16,32], index: 0, kind: input, shape index: {}]   ;;  %s3462_s1 = inlined_call_operand.vmem [shape: bf16[32,32], index: 1, kind: input, shape index: {}]   ;;  %s3463_s2 = inlined_call_operand.vmem [shape: f32[2,1,16], index: 2, kind: input, shape index: {}]   ;;  %s3464_s3 = inlined_call_operand.vmem [shape: bf16[2,32,32], index: 3, kind: input, shape index: {}]   ;;  %s3465_s4 = inlined_call_operand.vmem [shape: bf16[2,32,64], index: 4, kind: input, shape index: {}]   ;;  %s3466_s5 = inlined_call_operand.vmem [shape: bf16[2,32,32], index: 5, kind: input, shape index: {}]   ;;  %s3467_s6 = inlined_call_operand.vmem [shape: bf16[2,32,128], index: 6, kind: input, shape index: {}]   ;;  %s3468_s7 = inlined_call_operand.vmem [shape: bf16[2,128,32], index: 7, kind: input, shape index: {}]   ;;  %s3469_s8 = inlined_call_operand.hbm [shape: f32[2,1,96], index: 8, kind: input, shape index: {}]   ;;  %s3470_s9 = inlined_call_operand.hbm [shape: f32[2,1,128], index: 9, kind: input, shape index: {}]   ;;  %s3471_s10 = inlined_call_operand.vmem [shape: f32[2,6,32], index: 10, kind: input, shape index: {}]   ;;  %s3472_s11 = inlined_call_operand.hbm [shape: f32[16,32], index: 11, kind: output, shape index: {}]  }
   0x1   :  { %3478 = sst [smem:[#allocation17_spill]] %s3464_s3 }
   0x2   :  { %3479 = sst [smem:[#allocation18_spill]] %s3469_s8 }
   0x3   :  { %3480 = sst [smem:[#allocation19_spill]] %s3470_s9 }
   0x4   :  { %16 = vsyncpa [#allocation4], 0 }
   0x5   :  { %18 = vsyncpa [#allocation4 + $0x1], 0 }
   0x6   :  { %19 = vsyncpa [#allocation7], 0 }
   0x7   :  { %21 = vsyncpa [#allocation7 + $0x1], 0 }
   0x8   :  { %22 = vsyncpa [#allocation5], 0  ;;  %s3007_s17 = smov 0   ;;  %s3009_s18 = smov 0  }
   0x9   :  { %s3011_s19 = smov 0   ;;  %s3013_s20 = smov 0  }
   0xa   :  { %s3015_s21 = smov 0   ;;  %s3017_s22 = smov 0  }
   0xb LB: > { %3481 = sst [smem:[#allocation12_spill]] %s2915_s18  ;;  %s3473_s23 = sadd.s32 4294967295, %s2931_s22   ;;  %s2931_s22 = sphi %s3017_s22, %s28_s22   ;;  %s2927_s21 = sphi %s3015_s21, %s3501_s21   ;;  %s2923_s20 = sphi %s3013_s20, %s3500_s20   ;;  %s2919_s19 = sphi %s3011_s19, %s3499_s19   ;;  %s2915_s18 = sphi %s3009_s18, %s3498_s18   ;;  %s2911_s17 = sphi %s3007_s17, %s3497_s17  }
   0xc   : > { %3482 = sst [smem:[#allocation13_spill]] %s2919_s19  ;;  %s37_s24 = sadd.s32 1, %s2927_s21 }
   0xd   : > { %3483 = sst [smem:[#allocation14_spill]] %s2927_s21  ;;  %p38_p0 = scmp.ge.s32.totalorder %s37_s24, 2 }
   0xe   : > { %s255_s25 = sadd.s32 1, %s2919_s19  ;;  %p262_p1 = scmp.ne.s32.totalorder %s2919_s19, %s2915_s18 }
   0xf   : > { %p263_p2 = scmp.eq.s32.totalorder %s2931_s22, 0  ;;  %s3503_s24 = smov (%p38_p0, %s37_s24), 0 }
  0x10   : > { %3484 = sst [smem:[#allocation15_spill]] %s3503_s24  ;;  %p268_p4 = scmp.ne.s32.totalorder %s2915_s18, %s2911_s17 }
  0x11   : > { %p3043_p3 = por %p263_p2, %p262_p1  ;;  %s252_s27 = ssub.s32 %s2927_s21, %s3503_s24 }
  0x12   : > { %p269_p5 = scmp.eq.s32.totalorder %s3473_s23, 0  ;;  %p253_p6 = scmp.eq.s32.totalorder %s252_s27, 0 }
  0x13   : > { %p2670_p8 = scmp.lt.s32.totalorder %s2931_s22, 2  ;;  %s3061_s30 = sand.u32 1, %s2919_s19  }
  0x14   : > { %p3052_p7 = por %p269_p5, %p268_p4  ;;  %s2363_s12 = sshll.u32 %s2927_s21, 4 }
  0x15   : > { %s3058_s29 = scalar_select %p253_p6, %s2919_s19, %s255_s25  }
  0x16   : > { %s3488_s8 = sld [smem:[#allocation18_spill]]  ;;  %s439_s16 = scalar_lea.vmem [#allocation3], %s3061_s30 }
  0x17   : > { %3487 = sst [smem:[#allocation16_spill]] %s3058_s29  ;;  %s446_s17 = sshll.u32 %s439_s16, 4  ;;  %s447_s17 = int_to_ptr.vmem [resolvable:$true] %s446_s17 }
  0x18   : > { %p3070_p9 = pnand %p2670_p8, %p3043_p3  ;;  %p2365_p10 = scmp.ge.s32.totalorder %s2931_s22, 1 }
  0x19   : > { %p475_p11 = scmp.lt.s32.totalorder %s2931_s22, 3  ;;  %s437_s25 = scalar_lea.sflag [#allocation4], %s3061_s30 }
  0x1a   : > { %p2795_p12 = pneg %p3070_p9  ;;  %s2806_s23 = scalar_lea.vmem %s447_s17, 16 }
  0x1b   : > { %p2807_p13 = scmp.ne.s32.totalorder %s447_s17, %s2806_s23  ;;  %s2933_s13 = smov [#allocation3]  }
  0x1c   : > { %s444_s15 = scalar_lea.hbm %s3488_s8, %s2363_s12  ;;  %s2811_s14 = sshll.u32 %s2933_s13, 4  ;;  %s2812_s14 = int_to_ptr.vmem [resolvable:$false] %s2811_s14 }
  0x1d   : > { %p2809_p0 = pnand %p2807_p13, %p2795_p12  ;;  %s2813_s26 = scalar_lea.vmem %s2812_s14, 32 }
  0x1e   : > { %p2814_p2 = scmp.lt.s32.totalorder %s447_s17, %s2812_s14  ;;  %p2815_p3 = scmp.lt.s32.totalorder %s2813_s26, %s2806_s23 }
  0x1f   : > { %p2810_p1 = pneg %p2809_p0 }
  0x20   : > { %p2816_p4 = por %p2815_p3, %p2814_p2 }
  0x22   : > { %p2817_p5 = pnand %p2816_p4, %p2810_p1 }
  0x24   : > { %2820 = shalt.err (!%p2817_p5)
}
  0x25   : > { %2666 = dma.hbm_to_vmem [thread:$0]  (!%p3070_p9), %s444_s15, 16, %s447_s17, %s437_s25  }
  0x26   : > { %p3088_p6 = pnand %p2365_p10, %p475_p11  ;;  %s3491_s9 = sld [smem:[#allocation19_spill]] }
  0x27   : > { %s456_s26 = scalar_lea.vmem [#allocation6], %s3061_s30  ;;  %s454_s24 = scalar_lea.sflag [#allocation7], %s3061_s30 }
  0x28   : > { %s463_s8 = sshll.u32 %s456_s26, 4  ;;  %s2934_s15 = smov [#allocation6]   ;;  %s464_s8 = int_to_ptr.vmem [resolvable:$true] %s463_s8 }
  0x29   : > { %s2834_s21 = scalar_lea.vmem %s464_s8, 16  ;;  %s2839_s17 = sshll.u32 %s2934_s15, 4  ;;  %s2840_s17 = int_to_ptr.vmem [resolvable:$false] %s2839_s17 }
  0x2a   : > { %p2835_p8 = scmp.ne.s32.totalorder %s464_s8, %s2834_s21  ;;  %s2841_s25 = scalar_lea.vmem %s2840_s17, 32 }
  0x2b   : > { %p2842_p10 = scmp.lt.s32.totalorder %s464_s8, %s2840_s17  ;;  %p2843_p11 = scmp.lt.s32.totalorder %s2841_s25, %s2834_s21 }
  0x2c   : > { %s461_s23 = scalar_lea.hbm %s3491_s9, %s2363_s12  ;;  %p2837_p13 = pnand %p2835_p8, %p2795_p12 }
  0x2d   : > { %p2844_p1 = por %p2843_p11, %p2842_p10 }
  0x2e   : > { %p2838_p0 = pneg %p2837_p13 }
  0x30   : > { %p2845_p2 = pnand %p2844_p1, %p2838_p0 }
  0x32   : > { %2848 = shalt.err (!%p2845_p2)
}
  0x33   : > { %2669 = dma.hbm_to_vmem [thread:$0]  (!%p3070_p9), %s461_s23, 16, %s464_s8, %s454_s24  }
  0x34   : > { %479 = sbr.rel (%p3088_p6) target bundleno = 4211 (0x1073), region = 64  ;;  %s3105_s30 = sand.u32 (!%p3088_p6), 1, %s2915_s18  }
  0x35   : > { %s482_s12 = scalar_lea.sflag (!%p3088_p6), [#allocation4], %s3105_s30 }
  0x39   : > { %2898 = dma.done.wait (%p3052_p7), %s482_s12, 16  }
  0x3a   : > { %2900 = vsyncadd (%p3052_p7), %s482_s12, 4294967280  ;;  %s490_s8 = scalar_lea.sflag [#allocation7], %s3105_s30 }
  0x3b   : > { %2902 = dma.done.wait (%p3052_p7), %s490_s8, 16  }
  0x3c   : > { %2904 = vsyncadd (%p3052_p7), %s490_s8, 4294967280  ;;  %p589_p9 = scmp.lt.s32.totalorder %s2923_s20, 1  ;;  %s3492_s3 = sld [smem:[#allocation17_spill]] }
  0x3d   : > { %p2377_p7 = scmp.ne.s32.totalorder %s2923_s20, 0 }
  0x3e   : > { %s590_s24 = scalar_select %p589_p9, %s2923_s20, 1 }
  0x40   : > { %s2427_s27 = sshll.u32 %s590_s24, 4  ;;  %s2431_s16 = sshll.u32 %s590_s24, 6 }
  0x41   : > { %s598_s25 = scalar_lea.vmem %s3465_s4, %s2427_s27  ;;  %s3130_s13 = scalar_lea.vmem %s3466_s5, %s2427_s27 }
  0x42   : > { %s593_s26 = scalar_lea.vmem %s3492_s3, %s2427_s27  ;;  %s3135_s9 = scalar_lea.vmem %s3467_s6, %s2427_s27 }
  0x43   : > { %s3140_s18 = scalar_lea.vmem %s3468_s7, %s2431_s16  ;;  %s2376_s14 = sshll.u32 %s590_s24, 3 }
  0x44   : > { %s3145_s15 = scalar_lea.vmem %s3471_s10, %s2376_s14  ;;  %623 = sbr.rel (%p2377_p7) target bundleno = 75 (0x4b), region = 76 }
  0x49   : > { %v624_v0 = vld [vmem:[%s3461_s0] sm:$0xff]  ;;  %vm626_vm0 = vcmask 261120   ;;  %v625_v1 = vld [vmem:[%s3461_s0 + $0x8] sm:$0xff] }
  0x4a   : > { %627 = vst.msk [vmem:[#allocation2] sm:$0xff] %vm626_vm0, %v624_v0  ;;  %628 = vst.msk [vmem:[#allocation2 + $0x8] sm:$0xff] %vm626_vm0, %v625_v1 }
  0x4b PF: > { %v2733_v2 = vld [vmem:[%s593_s26 + $0x8] sm:$0xff]   ;;  %v2935_v3 = vmov 0.0   ;;  %v2734_v4 = vld [vmem:[%s593_s26] sm:$0xff]   ;;  %vm2936_vm1 = vmmov 0   ;;  %vm662_vm2 = vcmask 261120   ;;  %s3493_s29 = scalar_lea.vmem [#allocation3], %s3105_s30 }
  0x4c   : > { %2491 = vmatprep.subr.bf16.mxu0 %v2935_v3  ;;  %2513 = vmatprep.subr.bf16.mxu1 %v2935_v3  ;;  %v2735_v7 = vld [vmem:[%s598_s25 + $0x8] sm:$0xff]   ;;  %v2736_v9 = vld [vmem:[%s598_s25] sm:$0xff]   ;;  %s2937_s24 = smov 96   ;;  %vm811_vm3 = vcmask 64512   ;;  %vm904_vm4 = vcmask 130048   ;;  %s2938_s23 = smov 120  }
  0x4d   : > { %2492 = vmatpush3.bf16.msra.mxu0 %v2733_v2  ;;  %2495 = vmatprep.mubr.msk.bf16.mxu0 %vm2936_vm1, %v2935_v3  ;;  %v2737_v10 = vld [vmem:[%s3462_s1] sm:$0xff]   ;;  %v2738_v12 = vld [vmem:[%s3462_s1 + $0x8] sm:$0xff]   ;;  %s2939_s21 = smov 88   ;;  %s2940_s17 = smov 112   ;;  %vm1246_vm5 = vcmask 1043456  }
  0x4e   : > { %2493 = vmatprep.subr.bf16.mxu0 %v2935_v3  ;;  %2515 = vmatprep.mubr.msk.bf16.mxu1 %vm2936_vm1, %v2935_v3  ;;  %v2378_v11 = vld [vmem:[%s3493_s29] ss:$0 sm:$0xff]  ;;  %v3207_v34 = vld [vmem:[%s3463_s2 + $0x1] ss:$0 sm:$0xff]  ;;  %s2941_s27 = smov 80   ;;  %s2942_s12 = smov 104  }
  0x4f   : > { %733 = vrot.lane.b32.xlu0 %v2378_v11, %s2937_s24  ;;  %v3212_v36 = vld [vmem:[%s3463_s2] ss:$0 sm:$0xff]  ;;  %s2943_s3 = smov 72   ;;  %p2422_p12 = scmp.ne.s32.totalorder %s2923_s20, 1 }
  0x51   : > { %v3158_v5 = vld [vmem:[#allocation2] sm:$0xff]  ;;  %v3160_v6 = vld [vmem:[#allocation2 + $0x8] sm:$0xff]  ;;  %2494 = vmatpush3.bf16.msra.mxu0 %v2734_v4 }
  0x52   : > { %v639_v8 = vpack.c.bf16 %v3160_v6, %v3158_v5  ;;  %2499 = vmatprep.subr.bf16.mxu0 %v2735_v7 }
  0x54   : > { %2496 = vmatmul.mubr.msk.bf16.vlgmr.msra.gmra.mxu0 %vm662_vm2, %v639_v8 }
  0x55   : > { %2500 = vmatpush3.bf16.msra.mxu0 %v2735_v7  ;;  %2503 = vmatprep.mubr.msk.bf16.mxu0 %vm662_vm2, %v2737_v10 }
  0x56   : > { %2501 = vmatprep.subr.bf16.mxu0 %v2736_v9 }
  0x59   : > { %2502 = vmatpush3.bf16.msra.mxu0 %v2736_v9 }
  0x5a   : > { %2507 = vmatprep.subr.bf16.mxu0 %v2935_v3 }
  0x5c   : > { %2504 = vmatmul.mubr.msk.bf16.vlgmr.msra.gmra.mxu0 %vm662_vm2, %v2738_v12 }
  0x5d   : > { %2509 = vmatprep.mubr.msk.bf16.mxu0 %vm2936_vm1, %v2935_v3 }
  0xc1   : > { %v734_v18 = vpop.permute.xlu0 %733 }
 0x114   : > { %v700_v13 = vpop.f32.mrf.mxu0 }
 0x115   : > { %v701_v31 = vadd.f32 %v2378_v11, %v700_v13 }
 0x116   : > { %v2497_v14 = vpop.f32.mrf.mxu0 }
 0x117   : > { %v3194_v33 = vpack.c.bf16 %v701_v31, %v701_v31 }
 0x118   : > { %v703_v15 = vpop.f32.mrf.mxu0 }
 0x119   : > { %v704_v29 = vadd.f32 %v2378_v11, %v703_v15 }
 0x11a   : > { %v2498_v16 = vpop.f32.mrf.mxu0 }
 0x11b   : > { %v3192_v32 = vpack.c.bf16 %v704_v29, %v704_v29 }
 0x11c   : > { %v2505_v17 = vpop.f32.mrf.mxu0 }
 0x11d   : > { %v785_v21 = vadd.f32 %v2505_v17, %v734_v18 }
 0x11e   : > { %v776_v19 = vpop.f32.mrf.mxu0 }
 0x11f   : > { %v777_v24 = vadd.f32 %v776_v19, %v734_v18 }
 0x120   : > { %v2506_v20 = vpop.f32.mrf.mxu0 }
 0x121   : > { %v788_v22 = vadd.f32 %v2506_v20, %v734_v18 }
 0x122   : > { %v779_v23 = vpop.f32.mrf.mxu0 }
 0x123   : > { %v3182_v25 = vpack.c.bf16 %v788_v22, %v785_v21  ;;  %v780_v26 = vadd.f32 %v779_v23, %v734_v18 }
 0x125   : > { %v3184_v27 = vpack.c.bf16 %v780_v26, %v777_v24  ;;  %v862_v28 = vsel %vm811_vm3, %v3182_v25, 0 }
 0x126   : > { %2514 = vmatpush3.bf16.xpose.msra.mxu1 %v862_v28 }
 0x127   : > { %v816_v30 = vsel %vm811_vm3, %v3184_v27, 0  ;;  %2525 = vmatprep.subr.bf16.mxu1 %v2935_v3 }
 0x128   : > { %2508 = vmatpush3.bf16.xpose.msra.mxu0 %v816_v30 }
 0x129   : > { %2519 = vmatprep.subr.bf16.mxu0 %v2935_v3 }
 0x12d   : > { %2516 = vmatmul.mubr.msk.bf16.vlgmr.msra.gmra.mxu1 %vm811_vm3, %v3192_v32 }
 0x12e   : > { %2527 = vmatprep.mubr.msk.bf16.mxu1 %vm2936_vm1, %v2935_v3 }
 0x12f   : > { %2510 = vmatmul.mubr.msk.bf16.vlgmr.msra.gmra.mxu0 %vm811_vm3, %v3194_v33 }
 0x130   : > { %2521 = vmatprep.mubr.msk.bf16.mxu0 %vm2936_vm1, %v2935_v3 }
 0x1ed   : > { %v898_v35 = vpop.f32.mrf.mxu1 }
 0x1ee   : > { %v899_v37 = vadd.f32 %v3207_v34, %v898_v35 }
 0x1ef   : > { %v852_v38 = vpop.f32.mrf.mxu0  ;;  %v2517_v39 = vpop.f32.mrf.mxu1 }
 0x1f0   : > { %v853_v40 = vadd.f32 %v3212_v36, %v852_v38  ;;  %v908_v41 = vsel %vm904_vm4, %v899_v37, -inf }
 0x1f1   : > { %909 = vmax.xlane.f32.xlu1 %v908_v41  ;;  %v2511_v42 = vpop.f32.mrf.mxu0  ;;  %v901_v43 = vpop.f32.mrf.mxu1 }
 0x1f2   : > { %v905_v44 = vsel %vm904_vm4, %v853_v40, -inf }
 0x1f3   : > { %v2518_v45 = vpop.f32.mrf.mxu1  ;;  %906 = vmax.xlane.f32.xlu0 %v905_v44  ;;  %v855_v46 = vpop.f32.mrf.mxu0 }
 0x1f5   : > { %v2512_v47 = vpop.f32.mrf.mxu0 }
 0x202   : > { %930 = vrot.lane.b32.xlu1 %v3184_v27, %s2937_s24 }
 0x206   : > { %977 = vrot.lane.b32.xlu1 %v3182_v25, %s2937_s24 }
 0x209   : > { %1078 = vrot.lane.b32.xlu0 %v3182_v25, %s2938_s23 }
 0x20a   : > { %1027 = vrot.lane.b32.xlu1 %v3184_v27, %s2938_s23 }
 0x27a   : > { %v910_v48 = vpop.xlane.xlu1 %909 }
 0x27b   : > { %v912_v49 = vsub.f32 %v899_v37, %v910_v48 }
 0x27c   : > { %v907_v50 = vpop.xlane.xlu0 %906 }
 0x27d   : > { %v915_v51 = vmul.f32 1.442695, %v912_v49  ;;  %v911_v52 = vsub.f32 %v853_v40, %v907_v50 }
 0x27e   : > { %v931_v53 = vpop.permute.xlu1 %930 }
 0x27f   : > { %2749 = vpow2.f32 %v915_v51  ;;  %v913_v54 = vmul.f32 1.442695, %v911_v52  ;;  %2520 = vmatpush3.bf16.msra.mxu0 %v931_v53 }
 0x280   : > { %2531 = vmatprep.subr.bf16.mxu0 %v2935_v3  ;;  %v1079_v1 = vpop.permute.xlu0 %1078 }
 0x281   : > { %2751 = vpow2.f32 %v913_v54  ;;  %v1084_v7 = vsel %vm811_vm3, %v1079_v1, 0  ;;  %v796_v1 = vld [vmem:[%s3130_s13 + $0x4] sm:$0xf] }
 0x282   : > { %v978_v55 = vpop.permute.xlu1 %977 }
 0x283   : > { %2526 = vmatpush3.bf16.msra.mxu1 %v978_v55  ;;  %v795_v55 = vld [vmem:[%s3130_s13] sm:$0xf] }
 0x284   : > { %2537 = vmatprep.subr.bf16.mxu1 %v2935_v3 }
 0x286   : > { %v1028_v60 = vpop.permute.xlu1 %1027 }
 0x287   : > { %v1033_v11 = vsel %vm811_vm3, %v1028_v60, 0 }
 0x28c   : > { %v2750_v56 = vpop.eup %2749 }
 0x28d   : > { %v920_v57 = vsel %vm904_vm4, %v2750_v56, 0.0 }
 0x28e   : > { %v2752_v58 = vpop.eup %2751  ;;  %921 = vadd.xlane.f32.xlu1 %v920_v57 }
 0x28f   : > { %v917_v59 = vsel %vm904_vm4, %v2752_v58, 0.0 }
 0x292   : > { %918 = vadd.xlane.f32.xlu1 %v917_v59 }
 0x2a3   : > { %1025 = vrot.lane.b32.xlu1 %v3194_v33, %s2938_s23 }
 0x2a7   : > { %1076 = vrot.lane.b32.xlu1 %v3192_v32, %s2938_s23 }
 0x317   : > { %v922_v61 = vpop.xlane.xlu1 %921 }
 0x318   : > { %2753 = vrcp.f32 %v922_v61 }
 0x31b   : > { %v919_v62 = vpop.xlane.xlu1 %918 }
 0x31c   : > { %2755 = vrcp.f32 %v919_v62 }
 0x31f   : > { %v1026_v9 = vpop.permute.xlu1 %1025 }
 0x323   : > { %v1077_v12 = vpop.permute.xlu1 %1076 }
 0x325   : > { %v2754_v63 = vpop.eup %2753 }
 0x326   : > { %v926_v0 = vmul.f32 %v2754_v63, %v2750_v56 }
 0x328   : > { %v928_v2 = vpack.c.bf16 %v926_v0, %v926_v0 }
 0x329   : > { %v2756_v4 = vpop.eup %2755 }
 0x32a   : > { %2528 = vmatmul.mubr.msk.bf16.vlgmr.msra.gmra.mxu1 %vm904_vm4, %v928_v2  ;;  %v925_v8 = vmul.f32 %v2756_v4, %v2752_v58  ;;  %v1295_v58 = vsel %vm1246_vm5, %v795_v55, 0  ;;  %v1248_v2 = vsel %vm1246_vm5, %v796_v1, 0 }
 0x32b   : > { %2538 = vmatpush3.bf16.xpose.msra.mxu1 %v1084_v7  ;;  %2539 = vmatprep.mubr.msk.bf16.mxu1 %vm2936_vm1, %v2935_v3 }
 0x32c   : > { %v927_v10 = vpack.c.bf16 %v925_v8, %v925_v8  ;;  %2549 = vmatprep.subr.bf16.mxu1 %v2935_v3 }
 0x32e   : > { %2522 = vmatmul.mubr.msk.bf16.vlgmr.msra.gmra.mxu0 %vm904_vm4, %v927_v10 }
 0x32f   : > { %2532 = vmatpush3.bf16.xpose.msra.mxu0 %v1033_v11  ;;  %2533 = vmatprep.mubr.msk.bf16.mxu0 %vm2936_vm1, %v2935_v3 }
 0x330   : > { %2543 = vmatprep.subr.bf16.mxu0 %v2935_v3 }
 0x332   : > { %2540 = vmatmul.mubr.msk.bf16.vlgmr.msra.gmra.mxu1 %vm811_vm3, %v1077_v12 }
 0x333   : > { %2551 = vmatprep.mubr.msk.bf16.mxu1 %vm2936_vm1, %v2935_v3 }
 0x336   : > { %2534 = vmatmul.mubr.msk.bf16.vlgmr.msra.gmra.mxu0 %vm811_vm3, %v1026_v9 }
 0x337   : > { %2545 = vmatprep.mubr.msk.bf16.mxu0 %vm2936_vm1, %v2935_v3 }
 0x3ea   : > { %v3246_v13 = vpop.f32.mrf.mxu1 }
 0x3ec   : > { %v2529_v14 = vpop.f32.mrf.mxu1 }
 0x3ee   : > { %v3248_v15 = vpop.f32.mrf.mxu0  ;;  %v1020_v16 = vpop.f32.mrf.mxu1 }
 0x3ef   : > { %v1023_v17 = vpack.c.bf16 %v3246_v13, %v3248_v15 }
 0x3f0   : > { %v2523_v18 = vpop.f32.mrf.mxu0  ;;  %v2530_v19 = vpop.f32.mrf.mxu1 }
 0x3f2   : > { %v973_v20 = vpop.f32.mrf.mxu0  ;;  %v1120_v21 = vpop.f32.mrf.mxu1 }
 0x3f3   : > { %v1121_v22 = vadd.f32 %v3207_v34, %v1120_v21 }
 0x3f4   : > { %v2524_v23 = vpop.f32.mrf.mxu0  ;;  %v2541_v24 = vpop.f32.mrf.mxu1 }
 0x3f5   : > { %v1129_v26 = vsel %vm904_vm4, %v1121_v22, -inf }
 0x3f6   : > { %1130 = vmax.xlane.f32.xlu0 %v1129_v26  ;;  %v1069_v28 = vpop.f32.mrf.mxu0  ;;  %v1123_v29 = vpop.f32.mrf.mxu1 }
 0x3f7   : > { %v1070_v30 = vadd.f32 %v3212_v36, %v1069_v28 }
 0x3f8   : > { %v2535_v31 = vpop.f32.mrf.mxu0  ;;  %v2542_v35 = vpop.f32.mrf.mxu1 }
 0x3f9   : > { %v1126_v37 = vsel %vm904_vm4, %v1070_v30, -inf }
 0x3fa   : > { %1127 = vmax.xlane.f32.xlu1 %v1126_v37  ;;  %v1072_v38 = vpop.f32.mrf.mxu0 }
 0x3fc   : > { %v2536_v39 = vpop.f32.mrf.mxu0 }
 0x40c   : > { %1150 = vrot.lane.b32.xlu0 %v3184_v27, %s2939_s21 }
 0x410   : > { %1390 = vrot.lane.b32.xlu0 %v3182_v25, %s2940_s17 }
 0x414   : > { %1388 = vrot.lane.b32.xlu0 %v3192_v32, %s2940_s17 }
 0x47f   : > { %v1131_v40 = vpop.xlane.xlu0 %1130 }
 0x480   : > { %v1133_v41 = vsub.f32 %v1121_v22, %v1131_v40 }
 0x482   : > { %v1136_v42 = vmul.f32 1.442695, %v1133_v41 }
 0x483   : > { %v1151_v43 = vpop.permute.xlu0 %1150  ;;  %v1128_v44 = vpop.xlane.xlu1 %1127 }
 0x484   : > { %2757 = vpow2.f32 %v1136_v42  ;;  %v1132_v45 = vsub.f32 %v1070_v30, %v1128_v44  ;;  %2544 = vmatpush3.bf16.msra.mxu0 %v1151_v43 }
 0x485   : > { %2555 = vmatprep.subr.bf16.mxu0 %v2935_v3 }
 0x486   : > { %v1134_v46 = vmul.f32 1.442695, %v1132_v45 }
 0x487   : > { %v1391_v62 = vpop.permute.xlu0 %1390 }
 0x488   : > { %2759 = vpow2.f32 %v1134_v46  ;;  %v1396_v63 = vsel %vm811_vm3, %v1391_v62, 0 }
 0x48b   : > { %v1389_v0 = vpop.permute.xlu0 %1388 }
 0x491   : > { %v2758_v47 = vpop.eup %2757 }
 0x492   : > { %v1141_v48 = vsel %vm904_vm4, %v2758_v47, 0.0 }
 0x493   : > { %1142 = vadd.xlane.f32.xlu1 %v1141_v48 }
 0x495   : > { %v2760_v49 = vpop.eup %2759 }
 0x496   : > { %v1138_v50 = vsel %vm904_vm4, %v2760_v49, 0.0 }
 0x497   : > { %1139 = vadd.xlane.f32.xlu1 %v1138_v50 }
 0x4a8   : > { %1196 = vrot.lane.b32.xlu1 %v3182_v25, %s2939_s21 }
 0x4ac   : > { %1340 = vrot.lane.b32.xlu1 %v3184_v27, %s2940_s17 }
 0x4b0   : > { %1338 = vrot.lane.b32.xlu1 %v3194_v33, %s2940_s17 }
 0x51c   : > { %v1143_v51 = vpop.xlane.xlu1 %1142 }
 0x51d   : > { %2761 = vrcp.f32 %v1143_v51 }
 0x520   : > { %v1140_v52 = vpop.xlane.xlu1 %1139 }
 0x521   : > { %2763 = vrcp.f32 %v1140_v52 }
 0x524   : > { %v1197_v53 = vpop.permute.xlu1 %1196 }
 0x525   : > { %2550 = vmatpush3.bf16.msra.mxu1 %v1197_v53 }
 0x526   : > { %2561 = vmatprep.subr.bf16.mxu1 %v2935_v3 }
 0x528   : > { %v1341_v8 = vpop.permute.xlu1 %1340 }
 0x529   : > { %v1346_v14 = vsel %vm811_vm3, %v1341_v8, 0 }
 0x52a   : > { %v2762_v54 = vpop.eup %2761 }
 0x52b   : > { %v1147_v56 = vmul.f32 %v2762_v54, %v2758_v47 }
 0x52c   : > { %v1339_v20 = vpop.permute.xlu1 %1338 }
 0x52d   : > { %v1149_v57 = vpack.c.bf16 %v1147_v56, %v1147_v56 }
 0x52e   : > { %v2764_v59 = vpop.eup %2763 }
 0x52f   : > { %2552 = vmatmul.mubr.msk.bf16.vlgmr.msra.gmra.mxu1 %vm904_vm4, %v1149_v57  ;;  %v1146_v60 = vmul.f32 %v2764_v59, %v2760_v49 }
 0x530   : > { %2562 = vmatpush3.bf16.msra.mxu1 %v1295_v58  ;;  %2563 = vmatprep.mubr.msk.bf16.mxu1 %vm2936_vm1, %v2935_v3 }
 0x531   : > { %v1148_v61 = vpack.c.bf16 %v1146_v60, %v1146_v60  ;;  %2573 = vmatprep.subr.bf16.mxu1 %v2935_v3 }
 0x533   : > { %2546 = vmatmul.mubr.msk.bf16.vlgmr.msra.gmra.mxu0 %vm904_vm4, %v1148_v61 }
 0x534   : > { %2557 = vmatprep.mubr.msk.bf16.mxu0 %vm2936_vm1, %v2935_v3  ;;  %2556 = vmatpush3.bf16.msra.mxu0 %v1248_v2 }
 0x535   : > { %2567 = vmatprep.subr.bf16.mxu0 %v2935_v3 }
 0x537   : > { %2564 = vmatmul.mubr.msk.bf16.vlgmr.msra.gmra.mxu1 %vm811_vm3, %v1023_v17 }
 0x538   : > { %2574 = vmatpush3.bf16.xpose.msra.mxu1 %v1396_v63  ;;  %2575 = vmatprep.mubr.msk.bf16.mxu1 %vm2936_vm1, %v2935_v3 }
 0x539   : > { %2585 = vmatprep.subr.bf16.mxu1 %v2935_v3 }
 0x53f   : > { %2576 = vmatmul.mubr.msk.bf16.vlgmr.msra.gmra.mxu1 %vm811_vm3, %v1389_v0  ;;  %v797_v0 = vld [vmem:[%s3130_s13 + $0x8] sm:$0xf] }
 0x540   : > { %2587 = vmatprep.mubr.msk.bf16.mxu1 %vm2936_vm1, %v2935_v3 }
 0x5ef   : > { %v1236_v4 = vpop.f32.mrf.mxu1 }
 0x5f1   : > { %v2553_v7 = vpop.f32.mrf.mxu1 }
 0x5f3   : > { %v1190_v9 = vpop.f32.mrf.mxu0  ;;  %v1239_v10 = vpop.f32.mrf.mxu1 }
 0x5f4   : > { %v1242_v11 = vpack.c.bf16 %v1236_v4, %v1190_v9  ;;  %v1559_v4 = vsel %vm1246_vm5, %v797_v0, 0 }
 0x5f5   : > { %v2547_v12 = vpop.f32.mrf.mxu0  ;;  %v2554_v13 = vpop.f32.mrf.mxu1 }
 0x5f6   : > { %2558 = vmatmul.mubr.msk.bf16.vlgmr.msra.gmra.mxu0 %vm811_vm3, %v1242_v11 }
 0x5f7   : > { %2568 = vmatpush3.bf16.xpose.msra.mxu0 %v1346_v14  ;;  %v1193_v15 = vpop.f32.mrf.mxu0  ;;  %v3291_v16 = vpop.f32.mrf.mxu1  ;;  %2569 = vmatprep.mubr.msk.bf16.mxu0 %vm2936_vm1, %v2935_v3 }
 0x5f8   : > { %2579 = vmatprep.subr.bf16.mxu0 %v2935_v3 }
 0x5f9   : > { %v2548_v17 = vpop.f32.mrf.mxu0  ;;  %v2565_v18 = vpop.f32.mrf.mxu1 }
 0x5fb   : > { %v3296_v19 = vpop.f32.mrf.mxu1 }
 0x5fd   : > { %v2566_v21 = vpop.f32.mrf.mxu1 }
 0x5fe   : > { %2570 = vmatmul.mubr.msk.bf16.vlgmr.msra.gmra.mxu0 %vm811_vm3, %v1339_v20 }
 0x5ff   : > { %v1432_v22 = vpop.f32.mrf.mxu1  ;;  %2581 = vmatprep.mubr.msk.bf16.mxu0 %vm2936_vm1, %v2935_v3 }
 0x600   : > { %v1433_v23 = vadd.f32 %v3207_v34, %v1432_v22 }
 0x601   : > { %v2577_v24 = vpop.f32.mrf.mxu1 }
 0x602   : > { %v1441_v26 = vsel %vm904_vm4, %v1433_v23, -inf }
 0x603   : > { %1442 = vmax.xlane.f32.xlu0 %v1441_v26  ;;  %v1435_v28 = vpop.f32.mrf.mxu1 }
 0x605   : > { %v2578_v29 = vpop.f32.mrf.mxu1 }
 0x68c   : > { %v1443_v30 = vpop.xlane.xlu0 %1442 }
 0x68d   : > { %v1445_v31 = vsub.f32 %v1433_v23, %v1443_v30 }
 0x68f   : > { %v1448_v35 = vmul.f32 1.442695, %v1445_v31 }
 0x691   : > { %2765 = vpow2.f32 %v1448_v35 }
 0x69e   : > { %v2766_v45 = vpop.eup %2765 }
 0x69f   : > { %v1453_v48 = vsel %vm904_vm4, %v2766_v45, 0.0 }
 0x6b6   : > { %v3303_v37 = vpop.f32.mrf.mxu0 }
 0x6b7   : > { %v1332_v30 = vadd.f32 %v3291_v16, %v3303_v37 }
 0x6b8   : > { %v2559_v38 = vpop.f32.mrf.mxu0 }
 0x6ba   : > { %v3305_v39 = vpop.f32.mrf.mxu0 }
 0x6bc   : > { %v2560_v40 = vpop.f32.mrf.mxu0 }
 0x6bd   : > { %v1335_v40 = vadd.f32 %v3296_v19, %v3305_v39 }
 0x6be   : > { %v1382_v41 = vpop.f32.mrf.mxu0 }
 0x6bf   : > { %v1383_v42 = vadd.f32 %v3212_v36, %v1382_v41 }
 0x6c0   : > { %v2571_v43 = vpop.f32.mrf.mxu0 }
 0x6c1   : > { %v1438_v44 = vsel %vm904_vm4, %v1383_v42, -inf }
 0x6c2   : > { %1439 = vmax.xlane.f32.xlu1 %v1438_v44  ;;  %v1385_v46 = vpop.f32.mrf.mxu0 }
 0x6c4   : > { %v2572_v47 = vpop.f32.mrf.mxu0 }
 0x6c6   : > { %1454 = vadd.xlane.f32.xlu1 %v1453_v48 }
 0x6d7   : > { %1508 = vrot.lane.b32.xlu1 %v3182_v25, %s2941_s27 }
 0x6db   : > { %1606 = vrot.lane.b32.xlu1 %v3184_v27, %s2942_s12 }
 0x6df   : > { %1604 = vrot.lane.b32.xlu1 %v3194_v33, %s2942_s12 }
 0x74b   : > { %v1440_v49 = vpop.xlane.xlu1 %1439 }
 0x74c   : > { %v1444_v50 = vsub.f32 %v1383_v42, %v1440_v49 }
 0x74e   : > { %v1446_v51 = vmul.f32 1.442695, %v1444_v50 }
 0x74f   : > { %v1455_v52 = vpop.xlane.xlu1 %1454 }
 0x750   : > { %2767 = vpow2.f32 %v1446_v51 }
 0x751   : > { %2769 = vrcp.f32 %v1455_v52 }
 0x753   : > { %v1509_v53 = vpop.permute.xlu1 %1508 }
 0x754   : > { %2586 = vmatpush3.bf16.msra.mxu1 %v1509_v53 }
 0x755   : > { %2597 = vmatprep.subr.bf16.mxu1 %v2935_v3 }
 0x757   : > { %v1607_v58 = vpop.permute.xlu1 %1606 }
 0x758   : > { %v1612_v33 = vsel %vm811_vm3, %v1607_v58, 0 }
 0x75b   : > { %v1605_v60 = vpop.permute.xlu1 %1604 }
 0x75d   : > { %v2768_v54 = vpop.eup %2767 }
 0x75e   : > { %v2770_v55 = vpop.eup %2769  ;;  %v1450_v56 = vsel %vm904_vm4, %v2768_v54, 0.0 }
 0x75f   : > { %1451 = vadd.xlane.f32.xlu0 %v1450_v56  ;;  %v1459_v57 = vmul.f32 %v2770_v55, %v2766_v45 }
 0x761   : > { %v1461_v59 = vpack.c.bf16 %v1459_v57, %v1459_v57 }
 0x763   : > { %2588 = vmatmul.mubr.msk.bf16.vlgmr.msra.gmra.mxu1 %vm904_vm4, %v1461_v59 }
 0x764   : > { %2598 = vmatpush3.bf16.xpose.msra.mxu1 %v1612_v33  ;;  %2599 = vmatprep.mubr.msk.bf16.mxu1 %vm2936_vm1, %v2935_v3 }
 0x765   : > { %2609 = vmatprep.subr.bf16.mxu1 %v2935_v3 }
 0x76b   : > { %2600 = vmatmul.mubr.msk.bf16.vlgmr.msra.gmra.mxu1 %vm811_vm3, %v1605_v60 }
 0x76c   : > { %2611 = vmatprep.mubr.msk.bf16.mxu1 %vm2936_vm1, %v2935_v3 }
 0x775   : > { %1462 = vrot.lane.b32.xlu0 %v3184_v27, %s2941_s27 }
 0x779   : > { %1656 = vrot.lane.b32.xlu0 %v3182_v25, %s2942_s12 }
 0x77d   : > { %1654 = vrot.lane.b32.xlu0 %v3192_v32, %s2942_s12 }
 0x7e8   : > { %v1452_v61 = vpop.xlane.xlu0 %1451 }
 0x7e9   : > { %2771 = vrcp.f32 %v1452_v61 }
 0x7ec   : > { %v1463_v62 = vpop.permute.xlu0 %1462 }
 0x7ed   : > { %2580 = vmatpush3.bf16.msra.mxu0 %v1463_v62 }
 0x7ee   : > { %2591 = vmatprep.subr.bf16.mxu0 %v2935_v3 }
 0x7f0   : > { %v1657_v17 = vpop.permute.xlu0 %1656 }
 0x7f1   : > { %v1662_v22 = vsel %vm811_vm3, %v1657_v17, 0 }
 0x7f4   : > { %v1655_v24 = vpop.permute.xlu0 %1654 }
 0x7f6   : > { %v2772_v63 = vpop.eup %2771 }
 0x7f7   : > { %v1458_v1 = vmul.f32 %v2772_v63, %v2768_v54 }
 0x7f9   : > { %v1460_v2 = vpack.c.bf16 %v1458_v1, %v1458_v1 }
 0x7fb   : > { %2582 = vmatmul.mubr.msk.bf16.vlgmr.msra.gmra.mxu0 %vm904_vm4, %v1460_v2 }
 0x7fc   : > { %2592 = vmatpush3.bf16.msra.mxu0 %v1559_v4  ;;  %2593 = vmatprep.mubr.msk.bf16.mxu0 %vm2936_vm1, %v2935_v3 }
 0x7fd   : > { %2603 = vmatprep.subr.bf16.mxu0 %v2935_v3 }
 0x823   : > { %v1548_v32 = vpop.f32.mrf.mxu1 }
 0x825   : > { %v2589_v7 = vpop.f32.mrf.mxu1 }
 0x827   : > { %v1551_v8 = vpop.f32.mrf.mxu1 }
 0x828   : > { %v1870_v8 = vlaneseq }
 0x829   : > { %v2590_v9 = vpop.f32.mrf.mxu1 }
 0x82a   : > { %v3371_v9 = vshrl.u32 %v1870_v8, 7 }
 0x82b   : > { %v1648_v10 = vpop.f32.mrf.mxu1 }
 0x82c   : > { %v1649_v11 = vadd.f32 %v3212_v36, %v1648_v10  ;;  %v1872_v10 = vsub.s32 0, %v3371_v9 }
 0x82d   : > { %v2601_v12 = vpop.f32.mrf.mxu1 }
 0x82e   : > { %v1704_v13 = vsel %vm904_vm4, %v1649_v11, -inf }
 0x82f   : > { %1705 = vmax.xlane.f32.xlu1 %v1704_v13  ;;  %v1651_v14 = vpop.f32.mrf.mxu1 }
 0x831   : > { %v2602_v15 = vpop.f32.mrf.mxu1 }
 0x8b8   : > { %v1706_v26 = vpop.xlane.xlu1 %1705 }
 0x8b9   : > { %v1710_v28 = vsub.f32 %v1649_v11, %v1706_v26  ;;  %v3375_v11 = vld [vmem:[%s3145_s15] sm:$0x3f] }
 0x8ba   : > { %v1873_v12 = vrot.slane %v3375_v11, %v1872_v10 }
 0x8bb   : > { %v1502_v18 = vpop.f32.mrf.mxu0  ;;  %v1712_v29 = vmul.f32 1.442695, %v1710_v28 }
 0x8bc   : > { %v1554_v20 = vpack.c.bf16 %v1548_v32, %v1502_v18 }
 0x8bd   : > { %v2583_v21 = vpop.f32.mrf.mxu0  ;;  %2773 = vpow2.f32 %v1712_v29 }
 0x8be   : > { %2594 = vmatmul.mubr.msk.bf16.vlgmr.msra.gmra.mxu0 %vm811_vm3, %v1554_v20 }
 0x8bf   : > { %2604 = vmatpush3.bf16.xpose.msra.mxu0 %v1662_v22  ;;  %v1505_v23 = vpop.f32.mrf.mxu0  ;;  %2605 = vmatprep.mubr.msk.bf16.mxu0 %vm2936_vm1, %v2935_v3 }
 0x8c0   : > { %2615 = vmatprep.subr.bf16.mxu0 %v2935_v3 }
 0x8c1   : > { %v2584_v36 = vpop.f32.mrf.mxu0 }
 0x8c6   : > { %2606 = vmatmul.mubr.msk.bf16.vlgmr.msra.gmra.mxu0 %vm811_vm3, %v1655_v24 }
 0x8c7   : > { %2617 = vmatprep.mubr.msk.bf16.mxu0 %vm2936_vm1, %v2935_v3 }
 0x8ca   : > { %v2774_v48 = vpop.eup %2773 }
 0x8cb   : > { %v1716_v49 = vsel %vm904_vm4, %v2774_v48, 0.0 }
 0x97e   : > { %v1595_v31 = vpop.f32.mrf.mxu0 }
 0x97f   : > { %v3345_v35 = vadd.f32 %v1595_v31, %v1332_v30 }
 0x980   : > { %v2595_v38 = vpop.f32.mrf.mxu0 }
 0x982   : > { %v1598_v41 = vpop.f32.mrf.mxu0 }
 0x983   : > { %v3349_v42 = vadd.f32 %v1598_v41, %v1335_v40 }
 0x984   : > { %v2596_v43 = vpop.f32.mrf.mxu0 }
 0x985   : > { %v2740_v43 = vld [vmem:[%s3135_s9] sm:$0xff]  }
 0x986   : > { %v1698_v44 = vpop.f32.mrf.mxu0 }
 0x987   : > { %v1699_v45 = vadd.f32 %v3207_v34, %v1698_v44  ;;  %v2741_v44 = vld [vmem:[%s3140_s18 + $0x38] sm:$0xff]  }
 0x988   : > { %v2607_v46 = vpop.f32.mrf.mxu0 }
 0x989   : > { %v1707_v47 = vsel %vm904_vm4, %v1699_v45, -inf }
 0x98a   : > { %1708 = vmax.xlane.f32.xlu0 %v1707_v47  ;;  %v1701_v16 = vpop.f32.mrf.mxu0 }
 0x98c   : > { %v2608_v37 = vpop.f32.mrf.mxu0 }
 0x98e   : > { %1717 = vadd.xlane.f32.xlu0 %v1716_v49  ;;  %v1907_v49 = vsub.s32 1, %v3371_v9 }
 0x9a4   : > { %1728 = vrot.lane.b32.xlu0 %v3184_v27, %s2943_s3  ;;  %v798_v27 = vld [vmem:[%s3130_s13 + $0xc] sm:$0xf] }
 0x9a5   : > { %v1825_v57 = vsel %vm1246_vm5, %v798_v27, 0 }
 0xa13   : > { %v1709_v19 = vpop.xlane.xlu0 %1708 }
 0xa14   : > { %v1711_v39 = vsub.f32 %v1699_v45, %v1709_v19 }
 0xa16   : > { %v1714_v50 = vmul.f32 1.442695, %v1711_v39 }
 0xa17   : > { %v1718_v51 = vpop.xlane.xlu0 %1717 }
 0xa18   : > { %2775 = vpow2.f32 %v1714_v50  ;;  %v1908_v50 = vrot.slane %v3375_v11, %v1907_v49 }
 0xa19   : > { %2777 = vrcp.f32 %v1718_v51  ;;  %v1913_v51 = vsub.s32 2, %v3371_v9 }
 0xa1b   : > { %v1729_v34 = vpop.permute.xlu0 %1728 }
 0xa1c   : > { %2610 = vmatpush3.bf16.msra.mxu1 %v1729_v34 }
 0xa1d   : > { %2621 = vmatprep.subr.bf16.mxu1 %v2935_v3 }
 0xa25   : > { %v2776_v52 = vpop.eup %2775 }
 0xa26   : > { %v2778_v53 = vpop.eup %2777  ;;  %v1719_v54 = vsel %vm904_vm4, %v2776_v52, 0.0 }
 0xa27   : > { %1720 = vadd.xlane.f32.xlu1 %v1719_v54  ;;  %v1724_v55 = vmul.f32 %v2778_v53, %v2774_v48  ;;  %v1914_v54 = vrot.slane %v3375_v11, %v1913_v51  ;;  %v2135_v51 = vsub.s32 4, %v3371_v9 }
 0xa29   : > { %v1726_v56 = vpack.c.bf16 %v1724_v55, %v1724_v55 }
 0xa2b   : > { %2612 = vmatmul.mubr.msk.bf16.vlgmr.msra.gmra.mxu1 %vm904_vm4, %v1726_v56 }
 0xa2c   : > { %2623 = vmatprep.mubr.msk.bf16.mxu1 %vm2936_vm1, %v2935_v3  ;;  %2622 = vmatpush3.bf16.msra.mxu1 %v1825_v57 }
 0xa2d   : > { %2635 = vmatprep.subr.bf16.mxu1 %v2935_v3 }
 0xa38   : > { %1774 = vrot.lane.b32.xlu1 %v3182_v25, %s2943_s3 }
 0xab0   : > { %v1721_v58 = vpop.xlane.xlu1 %1720 }
 0xab1   : > { %2779 = vrcp.f32 %v1721_v58  ;;  %v2742_v58 = vld [vmem:[%s3140_s18 + $0x30] sm:$0xff]  }
 0xab4   : > { %v1775_v59 = vpop.permute.xlu1 %1774 }
 0xab5   : > { %2616 = vmatpush3.bf16.msra.mxu0 %v1775_v59  ;;  %v2743_v59 = vld [vmem:[%s3140_s18 + $0x28] sm:$0xff]  }
 0xab6   : > { %2627 = vmatprep.subr.bf16.mxu0 %v2935_v3 }
 0xabe   : > { %v2780_v33 = vpop.eup %2779 }
 0xabf   : > { %v1725_v60 = vmul.f32 %v2780_v33, %v2776_v52  ;;  %v2744_v33 = vld [vmem:[%s3140_s18 + $0x20] sm:$0xff]  }
 0xac1   : > { %v1727_v61 = vpack.c.bf16 %v1725_v60, %v1725_v60  ;;  %v2745_v60 = vld [vmem:[%s3140_s18 + $0x18] sm:$0xff]  }
 0xac3   : > { %2618 = vmatmul.mubr.msk.bf16.vlgmr.msra.gmra.mxu0 %vm904_vm4, %v1727_v61  ;;  %v2746_v61 = vld [vmem:[%s3140_s18 + $0x10] sm:$0xff]  }
 0xac4   : > { %2631 = vmatprep.mubr.msk.bf16.mxu0 %vm2936_vm1, %v2935_v3 }
 0xaeb   : > { %v1768_v25 = vpop.f32.mrf.mxu1 }
 0xaed   : > { %v2613_v62 = vpop.f32.mrf.mxu1 }
 0xaee   : > { %v2748_v62 = vld [vmem:[%s3140_s18] sm:$0xff]  }
 0xaef   : > { %v1771_v63 = vpop.f32.mrf.mxu1 }
 0xaf1   : > { %v2614_v0 = vpop.f32.mrf.mxu1 }
 0xb83   : > { %v1814_v1 = vpop.f32.mrf.mxu0 }
 0xb84   : > { %v1820_v2 = vpack.c.bf16 %v1814_v1, %v1768_v25  ;;  %v2747_v25 = vld [vmem:[%s3140_s18 + $0x8] sm:$0xff]  }
 0xb85   : > { %v2619_v4 = vpop.f32.mrf.mxu0 }
 0xb86   : > { %2624 = vmatmul.mubr.msk.bf16.vlgmr.msra.gmra.mxu1 %vm811_vm3, %v1820_v2 }
 0xb87   : > { %v1817_v32 = vpop.f32.mrf.mxu0  ;;  %2651 = vmatprep.mubr.msk.bf16.mxu1 %vm2936_vm1, %v2935_v3  ;;  %2636 = vmatpush3.bf16.msra.mxu1 %v2741_v44 }
 0xb88   : > { %2637 = vmatprep.subr.bf16.mxu1 %v2935_v3 }
 0xb89   : > { %v2620_v7 = vpop.f32.mrf.mxu0 }
 0xb8b   : > { %2638 = vmatpush3.bf16.msra.mxu1 %v2742_v58 }
 0xb8c   : > { %2639 = vmatprep.subr.bf16.mxu1 %v2935_v3 }
 0xb8f   : > { %2640 = vmatpush3.bf16.msra.mxu1 %v2743_v59 }
 0xb90   : > { %2641 = vmatprep.subr.bf16.mxu1 %v2935_v3 }
 0xb93   : > { %2642 = vmatpush3.bf16.msra.mxu1 %v2744_v33 }
 0xb94   : > { %2643 = vmatprep.subr.bf16.mxu1 %v2935_v3 }
 0xb97   : > { %2644 = vmatpush3.bf16.msra.mxu1 %v2745_v60 }
 0xb98   : > { %2645 = vmatprep.subr.bf16.mxu1 %v2935_v3 }
 0xb9b   : > { %2646 = vmatpush3.bf16.msra.mxu1 %v2746_v61 }
 0xb9c   : > { %2647 = vmatprep.subr.bf16.mxu1 %v2935_v3 }
 0xb9f   : > { %2648 = vmatpush3.bf16.msra.mxu1 %v2747_v25 }
 0xba0   : > { %2649 = vmatprep.subr.bf16.mxu1 %v2935_v3 }
 0xba3   : > { %2650 = vmatpush3.bf16.msra.mxu1 %v2748_v62 }
 0xc46   : > { %v1861_v13 = vpop.f32.mrf.mxu1 }
 0xc47   : > { %v1868_v14 = vadd.f32 %v1861_v13, %v3345_v35 }
 0xc48   : > { %v2625_v15 = vpop.f32.mrf.mxu1 }
 0xc49   : > { %v1874_v17 = vadd.f32 %v1873_v12, %v1868_v14 }
 0xc4a   : > { %v1864_v18 = vpop.f32.mrf.mxu1 }
 0xc4b   : > { %v1869_v20 = vadd.f32 %v1864_v18, %v3349_v42  ;;  %v1876_v21 = vadd.f32 %v1874_v17, %v3158_v5 }
 0xc4c   : > { %v2626_v22 = vpop.f32.mrf.mxu1 }
 0xc4d   : > { %v1875_v23 = vadd.f32 %v1873_v12, %v1869_v20  ;;  %v1878_v36 = vsel %vm662_vm2, %v1876_v21, 0.0  ;;  %v2014_v22 = vsub.s32 3, %v3371_v9 }
 0xc4e   : > { %1879 = vadd.xlane.f32.xlu1 %v1878_v36 }
 0xc4f   : > { %v1877_v24 = vadd.f32 %v1875_v23, %v3160_v6  ;;  %v2739_v6 = vld [vmem:[%s3135_s9 + $0x8] sm:$0xff]   ;;  %s3494_s9 = scalar_lea.vmem [#allocation6], %s3105_s30  ;;  %v2015_v23 = vrot.slane %v3375_v11, %v2014_v22 }
 0xc50   : > { %2628 = vmatpush3.bf16.msra.mxu0 %v2739_v6  ;;  %v2410_v63 = vld [vmem:[%s3494_s9] ss:$0 sm:$0xff] }
 0xc51   : > { %v1881_v26 = vsel %vm662_vm2, %v1877_v24, 0.0  ;;  %2629 = vmatprep.subr.bf16.mxu0 %v2935_v3 }
 0xc52   : > { %1882 = vadd.xlane.f32.xlu0 %v1881_v26 }
 0xc54   : > { %2630 = vmatpush3.bf16.msra.mxu0 %v2740_v43 }
 0xcd7   : > { %v1880_v28 = vpop.xlane.xlu1 %1879 }
 0xcd8   : > { %v1885_v29 = vmul.f32 0.03125, %v1880_v28 }
 0xcda   : > { %v1887_v30 = vsub.f32 %v1876_v21, %v1885_v29 }
 0xcdb   : > { %v1883_v31 = vpop.xlane.xlu0 %1882 }
 0xcdc   : > { %v1886_v35 = vmul.f32 0.03125, %v1883_v31  ;;  %v1889_v38 = vmul.f32 %v1887_v30, %v1887_v30 }
 0xcde   : > { %v1888_v5 = vsub.f32 %v1877_v24, %v1886_v35  ;;  %v1891_v40 = vsel %vm662_vm2, %v1889_v38, 0.0 }
 0xcdf   : > { %1892 = vadd.xlane.f32.xlu0 %v1891_v40 }
 0xce0   : > { %v1890_v41 = vmul.f32 %v1888_v5, %v1888_v5 }
 0xce2   : > { %v1894_v42 = vsel %vm662_vm2, %v1890_v41, 0.0 }
 0xce3   : > { %1895 = vadd.xlane.f32.xlu1 %v1894_v42 }
 0xd68   : > { %v1893_v45 = vpop.xlane.xlu0 %1892 }
 0xd69   : > { %v1897_v46 = vmul.f32 0.03125, %v1893_v45 }
 0xd6b   : > { %v1899_v47 = vadd.f32 1e-05, %v1897_v46 }
 0xd6c   : > { %v1896_v48 = vpop.xlane.xlu1 %1895 }
 0xd6d   : > { %2781 = vrsqrt.f32 %v1899_v47  ;;  %v1898_v16 = vmul.f32 0.03125, %v1896_v48 }
 0xd6f   : > { %v1900_v37 = vadd.f32 1e-05, %v1898_v16 }
 0xd71   : > { %2783 = vrsqrt.f32 %v1900_v37 }
 0xd7a   : > { %v2782_v19 = vpop.eup %2781 }
 0xd7b   : > { %v1903_v39 = vmul.f32 %v2782_v19, %v1887_v30 }
 0xd7d   : > { %v1909_v53 = vmul.f32 %v1908_v50, %v1903_v39 }
 0xd7e   : > { %v2784_v34 = vpop.eup %2783 }
 0xd7f   : > { %v1904_v52 = vmul.f32 %v2784_v34, %v1888_v5  ;;  %v1915_v56 = vadd.f32 %v1914_v54, %v1909_v53  ;;  %v2141_v34 = vsub.s32 5, %v3371_v9 }
 0xd81   : > { %v1910_v55 = vmul.f32 %v1908_v50, %v1904_v52  ;;  %v2136_v52 = vrot.slane %v3375_v11, %v2135_v51 }
 0xd83   : > { %v1916_v27 = vadd.f32 %v1914_v54, %v1910_v55  ;;  %v2142_v54 = vrot.slane %v3375_v11, %v2141_v34 }
 0xd85   : > { %v1917_v57 = vpack.c.bf16 %v1916_v27, %v1915_v56 }
 0xd87   : > { %2632 = vmatmul.mubr.msk.bf16.vlgmr.msra.gmra.mxu0 %vm662_vm2, %v1917_v57 }
 0xe47   : > { %v1978_v0 = vpop.f32.mrf.mxu0 }
 0xe48   : > { %v1979_v1 = vadd.f32 %v2410_v63, %v1978_v0 }
 0xe49   : > { %v2633_v2 = vpop.f32.mrf.mxu0 }
 0xe4a   : > { %v1987_v4 = vmul.f32 0.70710677, %v1979_v1  ;;  %v1985_v15 = vmul.f32 0.5, %v1979_v1 }
 0xe4b   : > { %v1981_v32 = vpop.f32.mrf.mxu0 }
 0xe4c   : > { %2785 = verf.f32 %v1987_v4  ;;  %v1982_v7 = vadd.f32 %v2410_v63, %v1981_v32 }
 0xe4d   : > { %v2634_v8 = vpop.f32.mrf.mxu0 }
 0xe4e   : > { %v1988_v10 = vmul.f32 0.70710677, %v1982_v7  ;;  %v1986_v17 = vmul.f32 0.5, %v1982_v7 }
 0xe50   : > { %2787 = verf.f32 %v1988_v10 }
 0xe59   : > { %v2786_v12 = vpop.eup %2785 }
 0xe5a   : > { %v1991_v13 = vadd.f32 1.0, %v2786_v12 }
 0xe5c   : > { %v1993_v18 = vmul.f32 %v1991_v13, %v1985_v15 }
 0xe5d   : > { %v2788_v14 = vpop.eup %2787 }
 0xe5e   : > { %v1992_v3 = vadd.f32 1.0, %v2788_v14 }
 0xe60   : > { %v1994_v20 = vmul.f32 %v1992_v3, %v1986_v17 }
 0xe62   : > { %v1995_v21 = vpack.c.bf16 %v1994_v20, %v1993_v18 }
 0xe64   : > { %2652 = vmatmul.mubr.bf16.vlgmr.msra.gmra.mxu1 %v1995_v21 }
 0xf24   : > { %v2098_v36 = vpop.f32.mrf.mxu1 }
 0xf25   : > { %v2099_v24 = vadd.f32 %v2098_v36, %v2015_v23 }
 0xf26   : > { %v2653_v26 = vpop.f32.mrf.mxu1 }
 0xf27   : > { %v2105_v28 = vadd.f32 %v2099_v24, %v1915_v56 }
 0xf28   : > { %v2101_v29 = vpop.f32.mrf.mxu1 }
 0xf29   : > { %v2102_v30 = vadd.f32 %v2101_v29, %v2015_v23  ;;  %v2107_v31 = vsel %vm662_vm2, %v2105_v28, 0.0 }
 0xf2a   : > { %2108 = vadd.xlane.f32.xlu0 %v2107_v31  ;;  %v2654_v35 = vpop.f32.mrf.mxu1 }
 0xf2b   : > { %v2106_v38 = vadd.f32 %v2102_v30, %v1916_v27 }
 0xf2d   : > { %v2110_v5 = vsel %vm662_vm2, %v2106_v38, 0.0 }
 0xf2e   : > { %2111 = vadd.xlane.f32.xlu1 %v2110_v5 }
 0xfb3   : > { %v2109_v40 = vpop.xlane.xlu0 %2108 }
 0xfb4   : > { %v2113_v41 = vmul.f32 0.03125, %v2109_v40 }
 0xfb6   : > { %v2115_v42 = vsub.f32 %v2105_v28, %v2113_v41 }
 0xfb7   : > { %v2112_v6 = vpop.xlane.xlu1 %2111 }
 0xfb8   : > { %v2114_v43 = vmul.f32 0.03125, %v2112_v6  ;;  %v2117_v44 = vmul.f32 %v2115_v42, %v2115_v42 }
 0xfba   : > { %v2116_v45 = vsub.f32 %v2106_v38, %v2114_v43  ;;  %v2119_v46 = vsel %vm662_vm2, %v2117_v44, 0.0 }
 0xfbb   : > { %2120 = vadd.xlane.f32.xlu0 %v2119_v46 }
 0xfbc   : > { %v2118_v47 = vmul.f32 %v2116_v45, %v2116_v45 }
 0xfbe   : > { %v2122_v48 = vsel %vm662_vm2, %v2118_v47, 0.0 }
 0xfbf   : > { %2123 = vadd.xlane.f32.xlu1 %v2122_v48 }
0x1044   : > { %v2121_v16 = vpop.xlane.xlu0 %2120 }
0x1045   : > { %v2125_v37 = vmul.f32 0.03125, %v2121_v16 }
0x1047   : > { %v2127_v49 = vadd.f32 1e-05, %v2125_v37 }
0x1048   : > { %v2124_v19 = vpop.xlane.xlu1 %2123 }
0x1049   : > { %2789 = vrsqrt.f32 %v2127_v49  ;;  %v2126_v39 = vmul.f32 0.03125, %v2124_v19 }
0x104b   : > { %v2128_v50 = vadd.f32 1e-05, %v2126_v39 }
0x104d   : > { %2791 = vrsqrt.f32 %v2128_v50 }
0x1056   : > { %v2790_v53 = vpop.eup %2789 }
0x1057   : > { %v2131_v55 = vmul.f32 %v2790_v53, %v2115_v42 }
0x1059   : > { %v2137_v56 = vmul.f32 %v2136_v52, %v2131_v55 }
0x105a   : > { %v2792_v27 = vpop.eup %2791 }
0x105b   : > { %v2143_v57 = vadd.f32 %v2142_v54, %v2137_v56  ;;  %v2132_v58 = vmul.f32 %v2792_v27, %v2116_v45 }
0x105d   : > { %2145 = vst.msk [vmem:[#allocation2] sm:$0xff] %vm662_vm2, %v2143_v57  ;;  %v2138_v59 = vmul.f32 %v2136_v52, %v2132_v58  ;;  %2150 = sbr.rel (%p2422_p12) target bundleno = 4195 (0x1063), region = 80 }
0x105f   : > { %v2144_v33 = vadd.f32 %v2142_v54, %v2138_v59 }
0x1061   : > { %2146 = vst.msk [vmem:[#allocation2 + $0x8] sm:$0xff] %vm662_vm2, %v2144_v33 }
0x1062   : > { %2151 = vst.msk [vmem:[#allocation8] sm:$0xff] %vm662_vm2, %v2143_v57  ;;  %2152 = vst.msk [vmem:[#allocation8 + $0x8] sm:$0xff] %vm662_vm2, %v2144_v33 }
0x1063 PF: > { %s3495_s18 = sadd.s32 4294967295, %s2931_s22   ;;  %s2944_s13 = smov [#allocation8]  }
0x1064   : > { %p3428_p3 = scmp.eq.s32.totalorder %s3495_s18, 1  ;;  %s2162_s15 = sshll.u32 %s2944_s13, 4  ;;  %s2163_s15 = int_to_ptr.vmem [resolvable:$true] %s2162_s15 }
0x1065   : > { %s2849_s19 = scalar_lea.vmem %s2163_s15, 256  ;;  %p2856_p8 = scmp.lt.s32.totalorder %s2163_s15, %s2163_s15 }
0x1066   : > { %p2850_p4 = scmp.ne.s32.totalorder %s2163_s15, %s2849_s19  ;;  %p2857_p13 = scmp.lt.s32.totalorder %s2849_s19, %s2849_s19 }
0x1068   : > { %p2851_p5 = pnand %p2850_p4, %p3428_p3  ;;  %p2858_p0 = por %p2857_p13, %p2856_p8 }
0x106a   : > { %p2852_p6 = pneg %p2851_p5 }
0x106c   : > { %p2859_p10 = pnand %p2858_p0, %p2852_p6 }
0x106e   : > { %2862 = shalt.err (!%p2859_p10)
}
0x106f   : > { %s2945_s20 = smov 128   ;;  %s2946_s29 = smov 8  }
0x1070   : > { %2660 = dma.vmem_to_hbm [thread:$0]  (%p3428_p3), %s2163_s15, 256, %s3472_s11, [#allocation5], %s2945_s20, %s2945_s20, %s2946_s29  }
0x1071   : > { %2906 = dma.done.wait (%p3428_p3), [#allocation5], 256  }
0x1072   : > { %2908 = vsyncadd (%p3428_p3), [#allocation5], 4294967040 }
0x1073 PF: > { %s28_s22 = sadd.s32 1, %s2931_s22   ;;  %s3497_s17 = sld [smem:[#allocation12_spill]] }
0x1074   : > { %p25_p11 = scmp.ge.s32.totalorder %s28_s22, 4   ;;  %s3498_s18 = sld [smem:[#allocation13_spill]] }
0x1075   : > { %s3499_s19 = sld [smem:[#allocation16_spill]] }
0x1076   : > { %s3500_s20 = sld [smem:[#allocation14_spill]]  ;;  %27 = sbr.rel (!%p25_p11) target bundleno = 11 (0xb), region = 150 }
0x1077   : > { %s3501_s21 = sld [smem:[#allocation15_spill]] }
0x107b   :  { %2178 = vsyncpa [#allocation4], 1 }
0x107c   :  { %2180 = vsyncpa [#allocation4 + $0x1], 1 }
0x107d   :  { %2181 = vsyncpa [#allocation7], 1 }
0x107e   :  { %2183 = vsyncpa [#allocation7 + $0x1], 1 }
0x107f   :  { %2184 = vsyncpa [#allocation5], 1 }
0x1080   :  { %2186 = vsyncpa [#allocation5 + $0x1], 1 }

</bundles_post_ra>
